<compile_context>
chip_gen: v7x
topology: tpu7x:2x2x1
jax: 0.10.0
libtpu: 0.0.40
codegen_flags: <defaults>
</compile_context>

<pallas_src>
import math

import jax
import jax.numpy as jnp
from jax import lax
from jax.experimental import pallas as pl
from jax.experimental.pallas import tpu as pltpu


_CONV_CARRY_ROWS = 8                      # sublane-aligned tail carry (kernel_size <= 9)
_SQRT_2_OVER_PI = math.sqrt(2.0 / math.pi)


def _gelu_tanh(v):
    # tanh-approx GELU: the transcendental runs on the (otherwise idle) EUP slot
    # instead of ~10 VPU ops/element for the erf polynomial. |err| ~1e-3, below
    # the bf16 operand-rounding noise already present in the matmuls.
    return 0.5 * v * (1.0 + jnp.tanh(_SQRT_2_OVER_PI * (v + 0.044715 * v * v * v)))


def init_forget_gate(size, a=0.001, b=0.1, lo=-9.0, hi=-4.323):
    x = jnp.log(jnp.expm1(jnp.linspace(a, b, size)))
    x = (x - x.min()) / (x.max() - x.min())
    return x * abs(hi - lo) + lo


def _default_vmem_limit_bytes():
    """Generation-aware scoped-VMEM budget: ~100 MiB on 128 MiB chips (v5e/v6e),
    ~40 MiB on 64 MiB-physical v7x, conservative 40 MiB if the query fails."""
    cap = None
    try:
        cap = getattr(pltpu.get_tpu_info(), "vmem_capacity_bytes", None)
    except Exception:
        cap = None
    if not cap:
        return 40 * 1024 * 1024
    return int(max(32 * 1024 * 1024,
                   min(cap - 24 * 1024 * 1024, 100 * 1024 * 1024)))


# ----------------------------------------------------------------------------
# Pallas kernel: one (batch, T-block) tile per grid step, everything fused.
# ----------------------------------------------------------------------------
def hawk_block_kernel(x_ref, g1_ref, w_in_ref, cw_ref, cb_ref, w_g_ref,
                      b_g_ref, n8sp_ref, w_o_ref, g2_ref, w_grow_ref,
                      w_shr_ref, out_ref, h_carry, xh_tail):
    TT, D = x_ref.shape
    K, H = cw_ref.shape
    CARRY = xh_tail.shape[0]
    bf16 = jnp.bfloat16

    # Reset cross-T-block carries at the start of every sequence.
    @pl.when(pl.program_id(1) == 0)
    def _():
        h_carry[...] = jnp.zeros_like(h_carry)
        xh_tail[...] = jnp.zeros_like(xh_tail)

    row = lax.broadcasted_iota(jnp.int32, (TT, H), 0)

    def rms_norm(v, gamma):
        # PyTorch RMSNorm: x / ||x||_2 * (gamma * sqrt(dim)); tiny eps guards
        # an all-zero (padded) row against inf/NaN.
        inv = lax.rsqrt(jnp.sum(v * v, axis=-1, keepdims=True) + 1e-30)
        return v * inv * (gamma * jnp.float32(math.sqrt(v.shape[-1])))

    def shift_down(v, s):
        # out[t] = v[(t - s) mod n]; pltpu.roll follows the jnp.roll convention.
        return pltpu.roll(v, shift=s, axis=0)

    x = x_ref[...].astype(jnp.float32)                               # (TT, D)

    # ---------------- hawk branch: RMSNorm -> RG-LRU ----------------
    xn = rms_norm(x, g1_ref[...])
    gi = jnp.dot(xn.astype(bf16), w_in_ref[...],
                 preferred_element_type=jnp.float32)                 # (TT, 2H)
    gate = gi[:, :H]
    xh = gi[:, H:]

    # Causal depthwise conv1d.  In-block taps: sublane roll + zero mask.  The
    # first K-1 rows additionally see the previous block through an 8-row tail
    # carry -- no full-tile rolls of the previous block, no (TT, H) carry.
    cw = cw_ref[...].astype(jnp.float32)                             # (K, H)
    tail = xh_tail[...]                                              # (CARRY, H)
    row_c = lax.broadcasted_iota(jnp.int32, (CARRY, H), 0)

    y = cw[K - 1:K, :] * xh + cb_ref[...]
    head = jnp.zeros((CARRY, H), jnp.float32)
    for s in range(1, K):                                            # static unroll, K small
        w_s = cw[K - 1 - s:K - s, :]
        y = y + w_s * jnp.where(row >= s, shift_down(xh, s), 0.0)
        head = head + w_s * jnp.where(row_c < s, shift_down(tail, s), 0.0)
    if TT > CARRY:
        y = jnp.concatenate([y[:CARRY, :] + head, y[CARRY:, :]], axis=0)
    else:
        y = y + head
    xh_tail[...] = xh[TT - CARRY:, :]                                # carry for next block

    # Gates.  n8sp = -8 * softplus(forget_base) is precomputed outside the kernel.
    fg = jnp.dot(y.astype(bf16), w_g_ref[...],
                 preferred_element_type=jnp.float32) + b_g_ref[...]  # (TT, 2H)
    alpha = jnp.exp(n8sp_ref[...] * jax.nn.sigmoid(fg[:, :H]))
    beta = jnp.sqrt(1.0 - alpha * alpha + 1e-6)
    xs = beta * jax.nn.sigmoid(fg[:, H:]) * y

    # Linear recurrence h_t = alpha_t * h_{t-1} + xs_t as a Hillis-Steele
    # associative scan: log2(TT) full-vreg steps instead of TT serial (1, H)
    # updates.  Cross-block state enters through h_carry.
    A, X = alpha, xs
    d = 1
    while d < TT:                                                    # static unroll
        keep = row >= d
        X = jnp.where(keep, X + A * shift_down(X, d), X)
        A = jnp.where(keep, A * shift_down(A, d), A)
        d *= 2
    h = X + A * h_carry[...]                                         # (TT, H)
    h_carry[...] = h[TT - 1:TT, :]

    hawk = jnp.dot((_gelu_tanh(gate) * h).astype(bf16), w_o_ref[...],
                   preferred_element_type=jnp.float32)               # (TT, D)
    x1 = x + hawk                                                    # residual (dropout = id)

    # ---------------- gmlp branch: RMSNorm -> GatedMLP ----------------
    x1n = rms_norm(x1, g2_ref[...])
    gm = jnp.dot(x1n.astype(bf16), w_grow_ref[...],
                 preferred_element_type=jnp.float32)                 # (TT, 2*GH)
    GH = gm.shape[1] // 2
    mlp = jnp.dot((_gelu_tanh(gm[:, :GH]) * gm[:, GH:]).astype(bf16),
                  w_shr_ref[...], preferred_element_type=jnp.float32)
    out_ref[...] = (x1 + mlp).astype(out_ref.dtype)                  # residual (dropout = id)


def hawk_block(x, params, *, t_tile=None, single_buffer_weights=True,
               vmem_limit_bytes=None):
    B, T, D = x.shape
    K, H = params["conv_w"].shape
    GH = params["w_shrink"].shape[0]

    if t_tile is None:
        # TT=256 fills the 256-wide MXU on v6e/v7x; fall back to smaller divisors.
        t_tile = T
        for cand in (256, 128, 64, 32, 16, 8):
            if T % cand == 0:
                t_tile = cand
                break
    assert T % t_tile == 0, "T must be divisible by t_tile"
    assert t_tile >= 8 and (t_tile % 8 == 0 or t_tile == T), \
        "t_tile must be >= 8 and sublane aligned"
    assert K - 1 <= _CONV_CARRY_ROWS, "conv kernel_size must be <= 9"
    nt = T // t_tile

    if vmem_limit_bytes is None:
        vmem_limit_bytes = _default_vmem_limit_bytes()

    bf16, f32 = jnp.bfloat16, jnp.float32
    # bf16 weights feed the MXU natively; every dot accumulates in f32.
    w_in = params["w_in"].astype(bf16)
    w_g = params["w_gates"].astype(bf16)
    w_o = params["w_out"].astype(bf16)
    w_gr = params["w_grow"].astype(bf16)
    w_sh = params["w_shrink"].astype(bf16)
    # Precompute -8 * softplus(forget_base) once, outside the kernel.
    n8sp = (-8.0 * jax.nn.softplus(params["forget_base"].astype(f32))).astype(f32)

    # Constant-index (weight) blocks never change across the grid -> 1 buffer.
    spec_kw = {}
    if single_buffer_weights and hasattr(pl, "Buffered"):
        spec_kw = {"pipeline_mode": pl.Buffered(1)}

    def const_spec(shape):
        zeros = (0,) * len(shape)
        return pl.BlockSpec(shape, lambda b, t, _z=zeros: _z, **spec_kw)

    in_specs = [
        pl.BlockSpec((None, t_tile, D), lambda b, t: (b, t, 0)),   # x
        const_spec((1, D)),          # gamma1
        const_spec((D, 2 * H)),      # w_in     (bf16)
        const_spec((K, H)),          # conv_w
        const_spec((1, H)),          # conv_b
        const_spec((H, 2 * H)),      # w_gates  (bf16)
        const_spec((1, 2 * H)),      # b_gates
        const_spec((1, H)),          # -8 * softplus(forget_base)
        const_spec((H, D)),          # w_out    (bf16)
        const_spec((1, D)),          # gamma2
        const_spec((D, 2 * GH)),     # w_grow   (bf16)
        const_spec((GH, D)),         # w_shrink (bf16)
    ]
    out_spec = pl.BlockSpec((None, t_tile, D), lambda b, t: (b, t, 0))

    # NOTE: for best store/lane efficiency, D/H/GH should be multiples of 128
    # in production configs (the toy demo below is smaller).
    # TODO(synk): for large D/H on v7x (64 MiB VMEM), stream w_gates/w_grow/
    # w_shrink in output-N chunks (extra grid axis / pltpu.emit_pipeline)
    # instead of keeping them fully VMEM-resident.

    return pl.pallas_call(
        hawk_block_kernel,
        out_shape=jax.ShapeDtypeStruct((B, T, D), x.dtype),
        grid_spec=pltpu.PrefetchScalarGridSpec(
            num_scalar_prefetch=0,
            grid=(B, nt),
            in_specs=in_specs,
            out_specs=out_spec,
            scratch_shapes=[
                pltpu.VMEM((1, H), jnp.float32),                  # RG-LRU hidden-state carry
                pltpu.VMEM((_CONV_CARRY_ROWS, H), jnp.float32),   # prev-block conv tail
            ],
        ),
        compiler_params=pltpu.CompilerParams(
            dimension_semantics=("parallel", "arbitrary"),
            vmem_limit_bytes=vmem_limit_bytes),
    )(x, params["gamma1"], w_in, params["conv_w"], params["conv_b"],
      w_g, params["b_gates"], n8sp, w_o, params["gamma2"], w_gr, w_sh)


# ----------------------------------------------------------------------------
# pure-JAX reference (mirrors the PyTorch forward)
# ----------------------------------------------------------------------------
def hawk_block_ref(x, p, operand_dtype=jnp.float32, approx_gelu=False):
    B, T, D = x.shape
    K, H = p["conv_w"].shape
    sqrt_d = math.sqrt(D)

    def cast(a):
        return a.astype(operand_dtype).astype(jnp.float32)

    def mm(a, w):
        return jnp.dot(cast(a), cast(w), precision=jax.lax.Precision.HIGHEST)

    def rms(v, g):
        return v / jnp.linalg.norm(v, axis=-1, keepdims=True) * (g[0] * sqrt_d)

    gelu = _gelu_tanh if approx_gelu else (lambda v: jax.nn.gelu(v, approximate=False))

    # hawk
    xn = rms(x, p["gamma1"])
    gi = mm(xn, p["w_in"])
    gate, xh = gi[..., :H], gi[..., H:]
    xp = jnp.pad(xh, ((0, 0), (K - 1, 0), (0, 0)))
    y = p["conv_b"][0]
    for j in range(K):
        y = y + p["conv_w"][j] * xp[:, j:j + T, :]
    fg = mm(y, p["w_gates"]) + p["b_gates"][0]
    forget, inp = fg[..., :H], fg[..., H:]
    alpha = jnp.exp(-8.0 * jax.nn.softplus(p["forget_base"][0]) * jax.nn.sigmoid(forget))
    beta = jnp.sqrt(1.0 - alpha ** 2 + 1e-6)
    xs = beta * jax.nn.sigmoid(inp) * y

    def step(h, ax):
        a, xx = ax
        h = a * h + xx
        return h, h

    _, hs = lax.scan(step, jnp.zeros((B, H), jnp.float32),
                     (jnp.swapaxes(alpha, 0, 1), jnp.swapaxes(xs, 0, 1)))
    h = jnp.swapaxes(hs, 0, 1)
    x1 = x + mm(gelu(gate) * h, p["w_out"])

    # gmlp
    x1n = rms(x1, p["gamma2"])
    gm = mm(x1n, p["w_grow"])
    GH = gm.shape[-1] // 2
    return x1 + mm(gelu(gm[..., :GH]) * gm[..., GH:], p["w_shrink"])


# ----------------------------------------------------------------------------
if __name__ == "__main__":
    B, T, dim = 2, 32, 32
    expansion, gmlp_expansion, kernel_size = 2, 2, 4
    H = dim * expansion
    GH = dim * gmlp_expansion

    key = jax.random.PRNGKey(0)
    ks = jax.random.split(key, 12)

    params = {
        "gamma1": jnp.ones((1, dim), jnp.float32),
        "w_in": jax.random.normal(ks[0], (dim, 2 * H), jnp.float32) * dim ** -0.5,
        "conv_w": jax.random.normal(ks[1], (kernel_size, H), jnp.float32) * 0.1,
        "conv_b": jax.random.normal(ks[2], (1, H), jnp.float32) * 0.1,
        "w_gates": jax.random.normal(ks[3], (H, 2 * H), jnp.float32) * H ** -0.5,
        "b_gates": jax.random.normal(ks[4], (1, 2 * H), jnp.float32) * 0.1,
        "forget_base": init_forget_gate(H).astype(jnp.float32).reshape(1, H),
        "w_out": jax.random.normal(ks[5], (H, dim), jnp.float32) * H ** -0.5,
        "gamma2": jnp.ones((1, dim), jnp.float32),
        "w_grow": jax.random.normal(ks[6], (dim, 2 * GH), jnp.float32) * dim ** -0.5,
        "w_shrink": jax.random.normal(ks[7], (GH, dim), jnp.float32) * GH ** -0.5,
    }

    x = jax.random.normal(ks[8], (B, T, dim), jnp.float32)

    # t_tile=8 with T=32 -> 4 time blocks: exercises both the conv-tail carry
    # and the RG-LRU hidden-state carry across T-blocks.
    try:
        out = jax.block_until_ready(hawk_block(x, params, t_tile=8))
    except Exception:
        # Fallback for JAX versions without BlockSpec(pipeline_mode=pl.Buffered(1)).
        out = jax.block_until_ready(
            hawk_block(x, params, t_tile=8, single_buffer_weights=False))

    assert out.shape == (B, T, dim)
    assert bool(jnp.all(jnp.isfinite(out)))

    # Tight check vs a reference with matched operand rounding (bf16) and the
    # same tanh-approx GELU: validates tiling / carries / scan logic.
    ref_match = hawk_block_ref(x, params, operand_dtype=jnp.bfloat16, approx_gelu=True)
    err_match = float(jnp.max(jnp.abs(out - ref_match)))
    assert jnp.allclose(out, ref_match, atol=1e-2, rtol=1e-2), \
        f"matched-reference max abs diff {err_match}"

    # Looser check vs the exact f32 module semantics (erf GELU, f32 matmuls):
    # bounds bf16 quantization + GELU approximation error.
    ref_exact = hawk_block_ref(x, params)
    err_exact = float(jnp.max(jnp.abs(out - ref_exact)))
    assert jnp.allclose(out, ref_exact, atol=1e-1, rtol=1e-1), \
        f"exact-reference max abs diff {err_exact}"

    print("KERNEL_OK")
</pallas_src>

<mosaic_0001>
module attributes {stable_mosaic.version = 11 : i64} {
  func.func @hawk_block_kernel(%arg0: i32, %arg1: i32, %arg2: memref<1x8x32xf32, #tpu.memory_space<vmem>>, %arg3: memref<1x32xf32, #tpu.memory_space<vmem>>, %arg4: memref<32x128xbf16, #tpu.memory_space<vmem>>, %arg5: memref<4x64xf32, #tpu.memory_space<vmem>>, %arg6: memref<1x64xf32, #tpu.memory_space<vmem>>, %arg7: memref<64x128xbf16, #tpu.memory_space<vmem>>, %arg8: memref<1x128xf32, #tpu.memory_space<vmem>>, %arg9: memref<1x64xf32, #tpu.memory_space<vmem>>, %arg10: memref<64x32xbf16, #tpu.memory_space<vmem>>, %arg11: memref<1x32xf32, #tpu.memory_space<vmem>>, %arg12: memref<32x128xbf16, #tpu.memory_space<vmem>>, %arg13: memref<64x32xbf16, #tpu.memory_space<vmem>>, %arg14: memref<1x8x32xf32, #tpu.memory_space<vmem>>, %arg15: memref<1x64xf32, #tpu.memory_space<vmem>>, %arg16: memref<8x64xf32, #tpu.memory_space<vmem>>) attributes {dimension_semantics = [#tpu.dimension_semantics<parallel>, #tpu.dimension_semantics<arbitrary>], iteration_bounds = array<i64: 2, 4>, scalar_prefetch = 0 : i64, scratch_operands = 2 : i64, tpu.core_type = #tpu.core_type<tc>, window_params = [{transform_indices = @transform_0, window_bounds = array<i64: 1, 8, 32>}, {pipeline_mode = #tpu.pipeline_mode<synchronous>, transform_indices = @transform_1, window_bounds = array<i64: 1, 32>}, {pipeline_mode = #tpu.pipeline_mode<synchronous>, transform_indices = @transform_2, window_bounds = array<i64: 32, 128>}, {pipeline_mode = #tpu.pipeline_mode<synchronous>, transform_indices = @transform_3, window_bounds = array<i64: 4, 64>}, {pipeline_mode = #tpu.pipeline_mode<synchronous>, transform_indices = @transform_4, window_bounds = array<i64: 1, 64>}, {pipeline_mode = #tpu.pipeline_mode<synchronous>, transform_indices = @transform_5, window_bounds = array<i64: 64, 128>}, {pipeline_mode = #tpu.pipeline_mode<synchronous>, transform_indices = @transform_6, window_bounds = array<i64: 1, 128>}, {pipeline_mode = #tpu.pipeline_mode<synchronous>, transform_indices = @transform_7, window_bounds = array<i64: 1, 64>}, {pipeline_mode = #tpu.pipeline_mode<synchronous>, transform_indices = @transform_8, window_bounds = array<i64: 64, 32>}, {pipeline_mode = #tpu.pipeline_mode<synchronous>, transform_indices = @transform_9, window_bounds = array<i64: 1, 32>}, {pipeline_mode = #tpu.pipeline_mode<synchronous>, transform_indices = @transform_10, window_bounds = array<i64: 32, 128>}, {pipeline_mode = #tpu.pipeline_mode<synchronous>, transform_indices = @transform_11, window_bounds = array<i64: 64, 32>}, {transform_indices = @transform_12, window_bounds = array<i64: 1, 8, 32>}]} {
    %c0_i32 = arith.constant 0 : i32
    %0 = arith.cmpi eq, %arg1, %c0_i32 : i32
    %1 = arith.extui %0 : i1 to i32
    %c0_i32_0 = arith.constant 0 : i32
    %2 = arith.cmpi ne, %1, %c0_i32_0 : i32
    scf.if %2 {
      %cst_82 = arith.constant 0.000000e+00 : f32
      %207 = vector.broadcast %cst_82 : f32 to vector<1x64xf32>
      %c0_83 = arith.constant 0 : index
      %c0_84 = arith.constant 0 : index
      %208 = vector.load %arg15[%c0_83, %c0_84] : memref<1x64xf32, #tpu.memory_space<vmem>>, vector<1x64xf32>
      tpu.vector_store %arg15[%c0_83, %c0_84], %207 {strides = array<i32>} : memref<1x64xf32, #tpu.memory_space<vmem>>, vector<1x64xf32>,
      %cst_85 = arith.constant 0.000000e+00 : f32
      %209 = vector.broadcast %cst_85 : f32 to vector<8x64xf32>
      %c0_86 = arith.constant 0 : index
      %c0_87 = arith.constant 0 : index
      %210 = vector.load %arg16[%c0_86, %c0_87] : memref<8x64xf32, #tpu.memory_space<vmem>>, vector<8x64xf32>
      tpu.vector_store %arg16[%c0_86, %c0_87], %209 {strides = array<i32>} : memref<8x64xf32, #tpu.memory_space<vmem>>, vector<8x64xf32>,
    } else {
    }
    %3 = tpu.iota {dimensions = array<i32: 0>} : vector<8x64xi32>
    %c0 = arith.constant 0 : index
    %c0_1 = arith.constant 0 : index
    %c0_2 = arith.constant 0 : index
    %4 = vector.load %arg2[%c0, %c0_1, %c0_2] : memref<1x8x32xf32, #tpu.memory_space<vmem>>, vector<1x8x32xf32>
    %5 = vector.shape_cast %4 : vector<1x8x32xf32> to vector<8x32xf32>
    %c0_3 = arith.constant 0 : index
    %c0_4 = arith.constant 0 : index
    %6 = vector.load %arg3[%c0_3, %c0_4] : memref<1x32xf32, #tpu.memory_space<vmem>>, vector<1x32xf32>
    %7 = arith.mulf %5, %5 : vector<8x32xf32>
    %cst = arith.constant dense<0.000000e+00> : vector<8xf32>
    %8 = vector.multi_reduction <add>, %7, %cst [1] : vector<8x32xf32> to vector<8xf32>
    %9 = vector.shape_cast %8 : vector<8xf32> to vector<8x1xf32>
    %cst_5 = arith.constant 1.000000e-30 : f32
    %10 = vector.broadcast %cst_5 : f32 to vector<8x1xf32>
    %11 = arith.addf %9, %10 : vector<8x1xf32>
    %12 = math.rsqrt %11 : vector<8x1xf32>
    %13 = vector.broadcast %12 : vector<8x1xf32> to vector<8x32xf32>
    %14 = arith.mulf %5, %13 : vector<8x32xf32>
    %cst_6 = arith.constant 5.65685415 : f32
    %15 = vector.broadcast %cst_6 : f32 to vector<1x32xf32>
    %16 = arith.mulf %6, %15 : vector<1x32xf32>
    %17 = vector.broadcast %16 : vector<1x32xf32> to vector<8x32xf32>
    %18 = arith.mulf %14, %17 : vector<8x32xf32>
    %19 = arith.truncf %18 : vector<8x32xf32> to vector<8x32xbf16>
    %c0_7 = arith.constant 0 : index
    %c0_8 = arith.constant 0 : index
    %20 = vector.load %arg4[%c0_7, %c0_8] : memref<32x128xbf16, #tpu.memory_space<vmem>>, vector<32x128xbf16>
    %cst_9 = arith.constant dense<0.000000e+00> : vector<8x128xf32>
    %21 = tpu.matmul %19, %20, %cst_9 {dimension_numbers = #tpu.dot_dimension_numbers<[1], [0], [0], [1], [0, 0, 1, 1], [], []>} : vector<8x32xbf16>, vector<32x128xbf16>, vector<8x128xf32> -> vector<8x128xf32>
    %22 = vector.extract_strided_slice %21 {offsets = [0, 0], sizes = [8, 64], strides = [1, 1]} : vector<8x128xf32> to vector<8x64xf32>
    %23 = vector.extract_strided_slice %21 {offsets = [0, 64], sizes = [8, 64], strides = [1, 1]} : vector<8x128xf32> to vector<8x64xf32>
    %c0_10 = arith.constant 0 : index
    %c0_11 = arith.constant 0 : index
    %24 = vector.load %arg5[%c0_10, %c0_11] : memref<4x64xf32, #tpu.memory_space<vmem>>, vector<4x64xf32>
    %c0_12 = arith.constant 0 : index
    %c0_13 = arith.constant 0 : index
    %25 = vector.load %arg16[%c0_12, %c0_13] : memref<8x64xf32, #tpu.memory_space<vmem>>, vector<8x64xf32>
    %26 = tpu.iota {dimensions = array<i32: 0>} : vector<8x64xi32>
    %27 = vector.extract_strided_slice %24 {offsets = [3, 0], sizes = [1, 64], strides = [1, 1]} : vector<4x64xf32> to vector<1x64xf32>
    %28 = vector.broadcast %27 : vector<1x64xf32> to vector<8x64xf32>
    %29 = arith.mulf %28, %23 : vector<8x64xf32>
    %c0_14 = arith.constant 0 : index
    %c0_15 = arith.constant 0 : index
    %30 = vector.load %arg6[%c0_14, %c0_15] : memref<1x64xf32, #tpu.memory_space<vmem>>, vector<1x64xf32>
    %31 = vector.broadcast %30 : vector<1x64xf32> to vector<8x64xf32>
    %32 = arith.addf %29, %31 : vector<8x64xf32>
    %cst_16 = arith.constant 0.000000e+00 : f32
    %33 = vector.broadcast %cst_16 : f32 to vector<8x64xf32>
    %34 = vector.extract_strided_slice %24 {offsets = [2, 0], sizes = [1, 64], strides = [1, 1]} : vector<4x64xf32> to vector<1x64xf32>
    %c1_i32 = arith.constant 1 : i32
    %35 = vector.broadcast %c1_i32 : i32 to vector<8x64xi32>
    %36 = arith.cmpi sge, %3, %35 : vector<8x64xi32>
    %c1_i32_17 = arith.constant 1 : i32
    %37 = tpu.dynamic_rotate %23 by %c1_i32_17 dim 0 : vector<8x64xf32>, i32 -> vector<8x64xf32>
    %cst_18 = arith.constant 0.000000e+00 : f32
    %38 = vector.broadcast %cst_18 : f32 to vector<8x64xf32>
    %39 = arith.select %36, %37, %38 : vector<8x64xi1>, vector<8x64xf32>
    %40 = vector.broadcast %34 : vector<1x64xf32> to vector<8x64xf32>
    %41 = arith.mulf %40, %39 : vector<8x64xf32>
    %42 = arith.addf %32, %41 : vector<8x64xf32>
    %c1_i32_19 = arith.constant 1 : i32
    %43 = vector.broadcast %c1_i32_19 : i32 to vector<8x64xi32>
    %44 = arith.cmpi slt, %26, %43 : vector<8x64xi32>
    %c1_i32_20 = arith.constant 1 : i32
    %45 = tpu.dynamic_rotate %25 by %c1_i32_20 dim 0 : vector<8x64xf32>, i32 -> vector<8x64xf32>
    %cst_21 = arith.constant 0.000000e+00 : f32
    %46 = vector.broadcast %cst_21 : f32 to vector<8x64xf32>
    %47 = arith.select %44, %45, %46 : vector<8x64xi1>, vector<8x64xf32>
    %48 = vector.broadcast %34 : vector<1x64xf32> to vector<8x64xf32>
    %49 = arith.mulf %48, %47 : vector<8x64xf32>
    %50 = arith.addf %33, %49 : vector<8x64xf32>
    %51 = vector.extract_strided_slice %24 {offsets = [1, 0], sizes = [1, 64], strides = [1, 1]} : vector<4x64xf32> to vector<1x64xf32>
    %c2_i32 = arith.constant 2 : i32
    %52 = vector.broadcast %c2_i32 : i32 to vector<8x64xi32>
    %53 = arith.cmpi sge, %3, %52 : vector<8x64xi32>
    %c2_i32_22 = arith.constant 2 : i32
    %54 = tpu.dynamic_rotate %23 by %c2_i32_22 dim 0 : vector<8x64xf32>, i32 -> vector<8x64xf32>
    %cst_23 = arith.constant 0.000000e+00 : f32
    %55 = vector.broadcast %cst_23 : f32 to vector<8x64xf32>
    %56 = arith.select %53, %54, %55 : vector<8x64xi1>, vector<8x64xf32>
    %57 = vector.broadcast %51 : vector<1x64xf32> to vector<8x64xf32>
    %58 = arith.mulf %57, %56 : vector<8x64xf32>
    %59 = arith.addf %42, %58 : vector<8x64xf32>
    %c2_i32_24 = arith.constant 2 : i32
    %60 = vector.broadcast %c2_i32_24 : i32 to vector<8x64xi32>
    %61 = arith.cmpi slt, %26, %60 : vector<8x64xi32>
    %c2_i32_25 = arith.constant 2 : i32
    %62 = tpu.dynamic_rotate %25 by %c2_i32_25 dim 0 : vector<8x64xf32>, i32 -> vector<8x64xf32>
    %cst_26 = arith.constant 0.000000e+00 : f32
    %63 = vector.broadcast %cst_26 : f32 to vector<8x64xf32>
    %64 = arith.select %61, %62, %63 : vector<8x64xi1>, vector<8x64xf32>
    %65 = vector.broadcast %51 : vector<1x64xf32> to vector<8x64xf32>
    %66 = arith.mulf %65, %64 : vector<8x64xf32>
    %67 = arith.addf %50, %66 : vector<8x64xf32>
    %68 = vector.extract_strided_slice %24 {offsets = [0, 0], sizes = [1, 64], strides = [1, 1]} : vector<4x64xf32> to vector<1x64xf32>
    %c3_i32 = arith.constant 3 : i32
    %69 = vector.broadcast %c3_i32 : i32 to vector<8x64xi32>
    %70 = arith.cmpi sge, %3, %69 : vector<8x64xi32>
    %c3_i32_27 = arith.constant 3 : i32
    %71 = tpu.dynamic_rotate %23 by %c3_i32_27 dim 0 : vector<8x64xf32>, i32 -> vector<8x64xf32>
    %cst_28 = arith.constant 0.000000e+00 : f32
    %72 = vector.broadcast %cst_28 : f32 to vector<8x64xf32>
    %73 = arith.select %70, %71, %72 : vector<8x64xi1>, vector<8x64xf32>
    %74 = vector.broadcast %68 : vector<1x64xf32> to vector<8x64xf32>
    %75 = arith.mulf %74, %73 : vector<8x64xf32>
    %76 = arith.addf %59, %75 : vector<8x64xf32>
    %c3_i32_29 = arith.constant 3 : i32
    %77 = vector.broadcast %c3_i32_29 : i32 to vector<8x64xi32>
    %78 = arith.cmpi slt, %26, %77 : vector<8x64xi32>
    %c3_i32_30 = arith.constant 3 : i32
    %79 = tpu.dynamic_rotate %25 by %c3_i32_30 dim 0 : vector<8x64xf32>, i32 -> vector<8x64xf32>
    %cst_31 = arith.constant 0.000000e+00 : f32
    %80 = vector.broadcast %cst_31 : f32 to vector<8x64xf32>
    %81 = arith.select %78, %79, %80 : vector<8x64xi1>, vector<8x64xf32>
    %82 = vector.broadcast %68 : vector<1x64xf32> to vector<8x64xf32>
    %83 = arith.mulf %82, %81 : vector<8x64xf32>
    %84 = arith.addf %67, %83 : vector<8x64xf32>
    %85 = arith.addf %76, %84 : vector<8x64xf32>
    %c0_32 = arith.constant 0 : index
    %c0_33 = arith.constant 0 : index
    %86 = vector.load %arg16[%c0_32, %c0_33] : memref<8x64xf32, #tpu.memory_space<vmem>>, vector<8x64xf32>
    tpu.vector_store %arg16[%c0_32, %c0_33], %23 {strides = array<i32>} : memref<8x64xf32, #tpu.memory_space<vmem>>, vector<8x64xf32>,
    %87 = arith.truncf %85 : vector<8x64xf32> to vector<8x64xbf16>
    %c0_34 = arith.constant 0 : index
    %c0_35 = arith.constant 0 : index
    %88 = vector.load %arg7[%c0_34, %c0_35] : memref<64x128xbf16, #tpu.memory_space<vmem>>, vector<64x128xbf16>
    %cst_36 = arith.constant dense<0.000000e+00> : vector<8x128xf32>
    %89 = tpu.matmul %87, %88, %cst_36 {dimension_numbers = #tpu.dot_dimension_numbers<[1], [0], [0], [1], [0, 0, 1, 1], [], []>} : vector<8x64xbf16>, vector<64x128xbf16>, vector<8x128xf32> -> vector<8x128xf32>
    %c0_37 = arith.constant 0 : index
    %c0_38 = arith.constant 0 : index
    %90 = vector.load %arg8[%c0_37, %c0_38] : memref<1x128xf32, #tpu.memory_space<vmem>>, vector<1x128xf32>
    %91 = vector.broadcast %90 : vector<1x128xf32> to vector<8x128xf32>
    %92 = arith.addf %89, %91 : vector<8x128xf32>
    %c0_39 = arith.constant 0 : index
    %c0_40 = arith.constant 0 : index
    %93 = vector.load %arg9[%c0_39, %c0_40] : memref<1x64xf32, #tpu.memory_space<vmem>>, vector<1x64xf32>
    %94 = vector.extract_strided_slice %92 {offsets = [0, 0], sizes = [8, 64], strides = [1, 1]} : vector<8x128xf32> to vector<8x64xf32>
    %95 = arith.negf %94 : vector<8x64xf32>
    %96 = math.exp %95 : vector<8x64xf32>
    %cst_41 = arith.constant 1.000000e+00 : f32
    %97 = vector.broadcast %cst_41 : f32 to vector<8x64xf32>
    %98 = arith.addf %97, %96 : vector<8x64xf32>
    %99 = arith.divf %97, %98 : vector<8x64xf32>
    %100 = vector.broadcast %93 : vector<1x64xf32> to vector<8x64xf32>
    %101 = arith.mulf %100, %99 : vector<8x64xf32>
    %102 = math.exp %101 : vector<8x64xf32>
    %103 = arith.mulf %102, %102 : vector<8x64xf32>
    %cst_42 = arith.constant 1.000000e+00 : f32
    %104 = vector.broadcast %cst_42 : f32 to vector<8x64xf32>
    %105 = arith.subf %104, %103 : vector<8x64xf32>
    %cst_43 = arith.constant 9.99999997E-7 : f32
    %106 = vector.broadcast %cst_43 : f32 to vector<8x64xf32>
    %107 = arith.addf %105, %106 : vector<8x64xf32>
    %108 = math.sqrt %107 : vector<8x64xf32>
    %109 = vector.extract_strided_slice %92 {offsets = [0, 64], sizes = [8, 64], strides = [1, 1]} : vector<8x128xf32> to vector<8x64xf32>
    %110 = arith.negf %109 : vector<8x64xf32>
    %111 = math.exp %110 : vector<8x64xf32>
    %cst_44 = arith.constant 1.000000e+00 : f32
    %112 = vector.broadcast %cst_44 : f32 to vector<8x64xf32>
    %113 = arith.addf %112, %111 : vector<8x64xf32>
    %114 = arith.divf %112, %113 : vector<8x64xf32>
    %115 = arith.mulf %108, %114 : vector<8x64xf32>
    %116 = arith.mulf %115, %85 : vector<8x64xf32>
    %c1_i32_45 = arith.constant 1 : i32
    %117 = vector.broadcast %c1_i32_45 : i32 to vector<8x64xi32>
    %118 = arith.cmpi sge, %3, %117 : vector<8x64xi32>
    %c1_i32_46 = arith.constant 1 : i32
    %119 = tpu.dynamic_rotate %116 by %c1_i32_46 dim 0 : vector<8x64xf32>, i32 -> vector<8x64xf32>
    %120 = arith.mulf %102, %119 : vector<8x64xf32>
    %121 = arith.addf %116, %120 : vector<8x64xf32>
    %122 = arith.select %118, %121, %116 : vector<8x64xi1>, vector<8x64xf32>
    %c1_i32_47 = arith.constant 1 : i32
    %123 = tpu.dynamic_rotate %102 by %c1_i32_47 dim 0 : vector<8x64xf32>, i32 -> vector<8x64xf32>
    %124 = arith.mulf %102, %123 : vector<8x64xf32>
    %125 = arith.select %118, %124, %102 : vector<8x64xi1>, vector<8x64xf32>
    %c2_i32_48 = arith.constant 2 : i32
    %126 = vector.broadcast %c2_i32_48 : i32 to vector<8x64xi32>
    %127 = arith.cmpi sge, %3, %126 : vector<8x64xi32>
    %c2_i32_49 = arith.constant 2 : i32
    %128 = tpu.dynamic_rotate %122 by %c2_i32_49 dim 0 : vector<8x64xf32>, i32 -> vector<8x64xf32>
    %129 = arith.mulf %125, %128 : vector<8x64xf32>
    %130 = arith.addf %122, %129 : vector<8x64xf32>
    %131 = arith.select %127, %130, %122 : vector<8x64xi1>, vector<8x64xf32>
    %c2_i32_50 = arith.constant 2 : i32
    %132 = tpu.dynamic_rotate %125 by %c2_i32_50 dim 0 : vector<8x64xf32>, i32 -> vector<8x64xf32>
    %133 = arith.mulf %125, %132 : vector<8x64xf32>
    %134 = arith.select %127, %133, %125 : vector<8x64xi1>, vector<8x64xf32>
    %c4_i32 = arith.constant 4 : i32
    %135 = vector.broadcast %c4_i32 : i32 to vector<8x64xi32>
    %136 = arith.cmpi sge, %3, %135 : vector<8x64xi32>
    %c4_i32_51 = arith.constant 4 : i32
    %137 = tpu.dynamic_rotate %131 by %c4_i32_51 dim 0 : vector<8x64xf32>, i32 -> vector<8x64xf32>
    %138 = arith.mulf %134, %137 : vector<8x64xf32>
    %139 = arith.addf %131, %138 : vector<8x64xf32>
    %140 = arith.select %136, %139, %131 : vector<8x64xi1>, vector<8x64xf32>
    %c4_i32_52 = arith.constant 4 : i32
    %141 = tpu.dynamic_rotate %134 by %c4_i32_52 dim 0 : vector<8x64xf32>, i32 -> vector<8x64xf32>
    %142 = arith.mulf %134, %141 : vector<8x64xf32>
    %143 = arith.select %136, %142, %134 : vector<8x64xi1>, vector<8x64xf32>
    %c0_53 = arith.constant 0 : index
    %c0_54 = arith.constant 0 : index
    %144 = vector.load %arg15[%c0_53, %c0_54] : memref<1x64xf32, #tpu.memory_space<vmem>>, vector<1x64xf32>
    %145 = vector.broadcast %144 : vector<1x64xf32> to vector<8x64xf32>
    %146 = arith.mulf %143, %145 : vector<8x64xf32>
    %147 = arith.addf %140, %146 : vector<8x64xf32>
    %148 = vector.extract_strided_slice %147 {offsets = [7, 0], sizes = [1, 64], strides = [1, 1]} : vector<8x64xf32> to vector<1x64xf32>
    %c0_55 = arith.constant 0 : index
    %c0_56 = arith.constant 0 : index
    %149 = vector.load %arg15[%c0_55, %c0_56] : memref<1x64xf32, #tpu.memory_space<vmem>>, vector<1x64xf32>
    tpu.vector_store %arg15[%c0_55, %c0_56], %148 {strides = array<i32>} : memref<1x64xf32, #tpu.memory_space<vmem>>, vector<1x64xf32>,
    %cst_57 = arith.constant 5.000000e-01 : f32
    %150 = vector.broadcast %cst_57 : f32 to vector<8x64xf32>
    %151 = arith.mulf %150, %22 : vector<8x64xf32>
    %cst_58 = arith.constant 4.471500e-02 : f32
    %152 = vector.broadcast %cst_58 : f32 to vector<8x64xf32>
    %153 = arith.mulf %152, %22 : vector<8x64xf32>
    %154 = arith.mulf %153, %22 : vector<8x64xf32>
    %155 = arith.mulf %154, %22 : vector<8x64xf32>
    %156 = arith.addf %22, %155 : vector<8x64xf32>
    %cst_59 = arith.constant 0.797884583 : f32
    %157 = vector.broadcast %cst_59 : f32 to vector<8x64xf32>
    %158 = arith.mulf %157, %156 : vector<8x64xf32>
    %159 = math.tanh %158 : vector<8x64xf32>
    %cst_60 = arith.constant 1.000000e+00 : f32
    %160 = vector.broadcast %cst_60 : f32 to vector<8x64xf32>
    %161 = arith.addf %160, %159 : vector<8x64xf32>
    %162 = arith.mulf %151, %161 : vector<8x64xf32>
    %163 = arith.mulf %162, %147 : vector<8x64xf32>
    %164 = arith.truncf %163 : vector<8x64xf32> to vector<8x64xbf16>
    %c0_61 = arith.constant 0 : index
    %c0_62 = arith.constant 0 : index
    %165 = vector.load %arg10[%c0_61, %c0_62] : memref<64x32xbf16, #tpu.memory_space<vmem>>, vector<64x32xbf16>
    %cst_63 = arith.constant dense<0.000000e+00> : vector<8x32xf32>
    %166 = tpu.matmul %164, %165, %cst_63 {dimension_numbers = #tpu.dot_dimension_numbers<[1], [0], [0], [1], [0, 0, 1, 1], [], []>} : vector<8x64xbf16>, vector<64x32xbf16>, vector<8x32xf32> -> vector<8x32xf32>
    %167 = arith.addf %5, %166 : vector<8x32xf32>
    %c0_64 = arith.constant 0 : index
    %c0_65 = arith.constant 0 : index
    %168 = vector.load %arg11[%c0_64, %c0_65] : memref<1x32xf32, #tpu.memory_space<vmem>>, vector<1x32xf32>
    %169 = arith.mulf %167, %167 : vector<8x32xf32>
    %cst_66 = arith.constant dense<0.000000e+00> : vector<8xf32>
    %170 = vector.multi_reduction <add>, %169, %cst_66 [1] : vector<8x32xf32> to vector<8xf32>
    %171 = vector.shape_cast %170 : vector<8xf32> to vector<8x1xf32>
    %cst_67 = arith.constant 1.000000e-30 : f32
    %172 = vector.broadcast %cst_67 : f32 to vector<8x1xf32>
    %173 = arith.addf %171, %172 : vector<8x1xf32>
    %174 = math.rsqrt %173 : vector<8x1xf32>
    %175 = vector.broadcast %174 : vector<8x1xf32> to vector<8x32xf32>
    %176 = arith.mulf %167, %175 : vector<8x32xf32>
    %cst_68 = arith.constant 5.65685415 : f32
    %177 = vector.broadcast %cst_68 : f32 to vector<1x32xf32>
    %178 = arith.mulf %168, %177 : vector<1x32xf32>
    %179 = vector.broadcast %178 : vector<1x32xf32> to vector<8x32xf32>
    %180 = arith.mulf %176, %179 : vector<8x32xf32>
    %181 = arith.truncf %180 : vector<8x32xf32> to vector<8x32xbf16>
    %c0_69 = arith.constant 0 : index
    %c0_70 = arith.constant 0 : index
    %182 = vector.load %arg12[%c0_69, %c0_70] : memref<32x128xbf16, #tpu.memory_space<vmem>>, vector<32x128xbf16>
    %cst_71 = arith.constant dense<0.000000e+00> : vector<8x128xf32>
    %183 = tpu.matmul %181, %182, %cst_71 {dimension_numbers = #tpu.dot_dimension_numbers<[1], [0], [0], [1], [0, 0, 1, 1], [], []>} : vector<8x32xbf16>, vector<32x128xbf16>, vector<8x128xf32> -> vector<8x128xf32>
    %184 = vector.extract_strided_slice %183 {offsets = [0, 0], sizes = [8, 64], strides = [1, 1]} : vector<8x128xf32> to vector<8x64xf32>
    %cst_72 = arith.constant 5.000000e-01 : f32
    %185 = vector.broadcast %cst_72 : f32 to vector<8x64xf32>
    %186 = arith.mulf %185, %184 : vector<8x64xf32>
    %cst_73 = arith.constant 4.471500e-02 : f32
    %187 = vector.broadcast %cst_73 : f32 to vector<8x64xf32>
    %188 = arith.mulf %187, %184 : vector<8x64xf32>
    %189 = arith.mulf %188, %184 : vector<8x64xf32>
    %190 = arith.mulf %189, %184 : vector<8x64xf32>
    %191 = arith.addf %184, %190 : vector<8x64xf32>
    %cst_74 = arith.constant 0.797884583 : f32
    %192 = vector.broadcast %cst_74 : f32 to vector<8x64xf32>
    %193 = arith.mulf %192, %191 : vector<8x64xf32>
    %194 = math.tanh %193 : vector<8x64xf32>
    %cst_75 = arith.constant 1.000000e+00 : f32
    %195 = vector.broadcast %cst_75 : f32 to vector<8x64xf32>
    %196 = arith.addf %195, %194 : vector<8x64xf32>
    %197 = arith.mulf %186, %196 : vector<8x64xf32>
    %198 = vector.extract_strided_slice %183 {offsets = [0, 64], sizes = [8, 64], strides = [1, 1]} : vector<8x128xf32> to vector<8x64xf32>
    %199 = arith.mulf %197, %198 : vector<8x64xf32>
    %200 = arith.truncf %199 : vector<8x64xf32> to vector<8x64xbf16>
    %c0_76 = arith.constant 0 : index
    %c0_77 = arith.constant 0 : index
    %201 = vector.load %arg13[%c0_76, %c0_77] : memref<64x32xbf16, #tpu.memory_space<vmem>>, vector<64x32xbf16>
    %cst_78 = arith.constant dense<0.000000e+00> : vector<8x32xf32>
    %202 = tpu.matmul %200, %201, %cst_78 {dimension_numbers = #tpu.dot_dimension_numbers<[1], [0], [0], [1], [0, 0, 1, 1], [], []>} : vector<8x64xbf16>, vector<64x32xbf16>, vector<8x32xf32> -> vector<8x32xf32>
    %203 = arith.addf %167, %202 : vector<8x32xf32>
    %c0_79 = arith.constant 0 : index
    %c0_80 = arith.constant 0 : index
    %c0_81 = arith.constant 0 : index
    %204 = vector.load %arg14[%c0_79, %c0_80, %c0_81] : memref<1x8x32xf32, #tpu.memory_space<vmem>>, vector<1x8x32xf32>
    %205 = vector.shape_cast %204 : vector<1x8x32xf32> to vector<8x32xf32>
    %206 = vector.shape_cast %203 : vector<8x32xf32> to vector<1x8x32xf32>
    tpu.vector_store %arg14[%c0_79, %c0_80, %c0_81], %206 {strides = array<i32>} : memref<1x8x32xf32, #tpu.memory_space<vmem>>, vector<1x8x32xf32>,
    return
  }
  func.func @transform_0(%arg0: i32, %arg1: i32) -> (i32, i32, i32) {
    %c0_i32 = arith.constant 0 : i32
    %c0_i32_0 = arith.constant 0 : i32
    return %arg0, %arg1, %c0_i32 : i32, i32, i32
  }
  func.func @transform_1(%arg0: i32, %arg1: i32) -> (i32, i32) {
    %c0_i32 = arith.constant 0 : i32
    %c0_i32_0 = arith.constant 0 : i32
    %c0_i32_1 = arith.constant 0 : i32
    return %c0_i32, %c0_i32_0 : i32, i32
  }
  func.func @transform_2(%arg0: i32, %arg1: i32) -> (i32, i32) {
    %c0_i32 = arith.constant 0 : i32
    %c0_i32_0 = arith.constant 0 : i32
    %c0_i32_1 = arith.constant 0 : i32
    return %c0_i32, %c0_i32_0 : i32, i32
  }
  func.func @transform_3(%arg0: i32, %arg1: i32) -> (i32, i32) {
    %c0_i32 = arith.constant 0 : i32
    %c0_i32_0 = arith.constant 0 : i32
    %c0_i32_1 = arith.constant 0 : i32
    return %c0_i32, %c0_i32_0 : i32, i32
  }
  func.func @transform_4(%arg0: i32, %arg1: i32) -> (i32, i32) {
    %c0_i32 = arith.constant 0 : i32
    %c0_i32_0 = arith.constant 0 : i32
    %c0_i32_1 = arith.constant 0 : i32
    return %c0_i32, %c0_i32_0 : i32, i32
  }
  func.func @transform_5(%arg0: i32, %arg1: i32) -> (i32, i32) {
    %c0_i32 = arith.constant 0 : i32
    %c0_i32_0 = arith.constant 0 : i32
    %c0_i32_1 = arith.constant 0 : i32
    return %c0_i32, %c0_i32_0 : i32, i32
  }
  func.func @transform_6(%arg0: i32, %arg1: i32) -> (i32, i32) {
    %c0_i32 = arith.constant 0 : i32
    %c0_i32_0 = arith.constant 0 : i32
    %c0_i32_1 = arith.constant 0 : i32
    return %c0_i32, %c0_i32_0 : i32, i32
  }
  func.func @transform_7(%arg0: i32, %arg1: i32) -> (i32, i32) {
    %c0_i32 = arith.constant 0 : i32
    %c0_i32_0 = arith.constant 0 : i32
    %c0_i32_1 = arith.constant 0 : i32
    return %c0_i32, %c0_i32_0 : i32, i32
  }
  func.func @transform_8(%arg0: i32, %arg1: i32) -> (i32, i32) {
    %c0_i32 = arith.constant 0 : i32
    %c0_i32_0 = arith.constant 0 : i32
    %c0_i32_1 = arith.constant 0 : i32
    return %c0_i32, %c0_i32_0 : i32, i32
  }
  func.func @transform_9(%arg0: i32, %arg1: i32) -> (i32, i32) {
    %c0_i32 = arith.constant 0 : i32
    %c0_i32_0 = arith.constant 0 : i32
    %c0_i32_1 = arith.constant 0 : i32
    return %c0_i32, %c0_i32_0 : i32, i32
  }
  func.func @transform_10(%arg0: i32, %arg1: i32) -> (i32, i32) {
    %c0_i32 = arith.constant 0 : i32
    %c0_i32_0 = arith.constant 0 : i32
    %c0_i32_1 = arith.constant 0 : i32
    return %c0_i32, %c0_i32_0 : i32, i32
  }
  func.func @transform_11(%arg0: i32, %arg1: i32) -> (i32, i32) {
    %c0_i32 = arith.constant 0 : i32
    %c0_i32_0 = arith.constant 0 : i32
    %c0_i32_1 = arith.constant 0 : i32
    return %c0_i32, %c0_i32_0 : i32, i32
  }
  func.func @transform_12(%arg0: i32, %arg1: i32) -> (i32, i32, i32) {
    %c0_i32 = arith.constant 0 : i32
    %c0_i32_0 = arith.constant 0 : i32
    return %arg0, %arg1, %c0_i32 : i32, i32, i32
  }
}

module attributes {stable_mosaic.version = 11 : i64} {
  func.func @hawk_block_kernel(%arg0: i32, %arg1: i32, %arg2: memref<1x8x32xf32, #tpu.memory_space<vmem>>, %arg3: memref<1x32xf32, #tpu.memory_space<vmem>>, %arg4: memref<32x128xbf16, #tpu.memory_space<vmem>>, %arg5: memref<4x64xf32, #tpu.memory_space<vmem>>, %arg6: memref<1x64xf32, #tpu.memory_space<vmem>>, %arg7: memref<64x128xbf16, #tpu.memory_space<vmem>>, %arg8: memref<1x128xf32, #tpu.memory_space<vmem>>, %arg9: memref<1x64xf32, #tpu.memory_space<vmem>>, %arg10: memref<64x32xbf16, #tpu.memory_space<vmem>>, %arg11: memref<1x32xf32, #tpu.memory_space<vmem>>, %arg12: memref<32x128xbf16, #tpu.memory_space<vmem>>, %arg13: memref<64x32xbf16, #tpu.memory_space<vmem>>, %arg14: memref<1x8x32xf32, #tpu.memory_space<vmem>>, %arg15: memref<1x64xf32, #tpu.memory_space<vmem>>, %arg16: memref<8x64xf32, #tpu.memory_space<vmem>>) attributes {dimension_semantics = [#tpu.dimension_semantics<parallel>, #tpu.dimension_semantics<arbitrary>], iteration_bounds = array<i64: 2, 4>, scalar_prefetch = 0 : i64, scratch_operands = 2 : i64, tpu.core_type = #tpu.core_type<tc>, window_params = [{transform_indices = @transform_0, window_bounds = array<i64: 1, 8, 32>}, {pipeline_mode = #tpu.pipeline_mode<synchronous>, transform_indices = @transform_1, window_bounds = array<i64: 1, 32>}, {pipeline_mode = #tpu.pipeline_mode<synchronous>, transform_indices = @transform_2, window_bounds = array<i64: 32, 128>}, {pipeline_mode = #tpu.pipeline_mode<synchronous>, transform_indices = @transform_3, window_bounds = array<i64: 4, 64>}, {pipeline_mode = #tpu.pipeline_mode<synchronous>, transform_indices = @transform_4, window_bounds = array<i64: 1, 64>}, {pipeline_mode = #tpu.pipeline_mode<synchronous>, transform_indices = @transform_5, window_bounds = array<i64: 64, 128>}, {pipeline_mode = #tpu.pipeline_mode<synchronous>, transform_indices = @transform_6, window_bounds = array<i64: 1, 128>}, {pipeline_mode = #tpu.pipeline_mode<synchronous>, transform_indices = @transform_7, window_bounds = array<i64: 1, 64>}, {pipeline_mode = #tpu.pipeline_mode<synchronous>, transform_indices = @transform_8, window_bounds = array<i64: 64, 32>}, {pipeline_mode = #tpu.pipeline_mode<synchronous>, transform_indices = @transform_9, window_bounds = array<i64: 1, 32>}, {pipeline_mode = #tpu.pipeline_mode<synchronous>, transform_indices = @transform_10, window_bounds = array<i64: 32, 128>}, {pipeline_mode = #tpu.pipeline_mode<synchronous>, transform_indices = @transform_11, window_bounds = array<i64: 64, 32>}, {transform_indices = @transform_12, window_bounds = array<i64: 1, 8, 32>}]} {
    %c0_i32 = arith.constant 0 : i32
    %0 = arith.cmpi eq, %arg1, %c0_i32 : i32
    %1 = arith.extui %0 : i1 to i32
    %c0_i32_0 = arith.constant 0 : i32
    %2 = arith.cmpi ne, %1, %c0_i32_0 : i32
    scf.if %2 {
      %cst_82 = arith.constant 0.000000e+00 : f32
      %207 = vector.broadcast %cst_82 : f32 to vector<1x64xf32>
      %c0_83 = arith.constant 0 : index
      %c0_84 = arith.constant 0 : index
      %208 = vector.load %arg15[%c0_83, %c0_84] : memref<1x64xf32, #tpu.memory_space<vmem>>, vector<1x64xf32>
      tpu.vector_store %arg15[%c0_83, %c0_84], %207 {strides = array<i32>} : memref<1x64xf32, #tpu.memory_space<vmem>>, vector<1x64xf32>,
      %cst_85 = arith.constant 0.000000e+00 : f32
      %209 = vector.broadcast %cst_85 : f32 to vector<8x64xf32>
      %c0_86 = arith.constant 0 : index
      %c0_87 = arith.constant 0 : index
      %210 = vector.load %arg16[%c0_86, %c0_87] : memref<8x64xf32, #tpu.memory_space<vmem>>, vector<8x64xf32>
      tpu.vector_store %arg16[%c0_86, %c0_87], %209 {strides = array<i32>} : memref<8x64xf32, #tpu.memory_space<vmem>>, vector<8x64xf32>,
    } else {
    }
    %3 = tpu.iota {dimensions = array<i32: 0>} : vector<8x64xi32>
    %c0 = arith.constant 0 : index
    %c0_1 = arith.constant 0 : index
    %c0_2 = arith.constant 0 : index
    %4 = vector.load %arg2[%c0, %c0_1, %c0_2] : memref<1x8x32xf32, #tpu.memory_space<vmem>>, vector<1x8x32xf32>
    %5 = vector.shape_cast %4 : vector<1x8x32xf32> to vector<8x32xf32>
    %c0_3 = arith.constant 0 : index
    %c0_4 = arith.constant 0 : index
    %6 = vector.load %arg3[%c0_3, %c0_4] : memref<1x32xf32, #tpu.memory_space<vmem>>, vector<1x32xf32>
    %7 = arith.mulf %5, %5 : vector<8x32xf32>
    %cst = arith.constant dense<0.000000e+00> : vector<8xf32>
    %8 = vector.multi_reduction <add>, %7, %cst [1] : vector<8x32xf32> to vector<8xf32>
    %9 = vector.shape_cast %8 : vector<8xf32> to vector<8x1xf32>
    %cst_5 = arith.constant 1.000000e-30 : f32
    %10 = vector.broadcast %cst_5 : f32 to vector<8x1xf32>
    %11 = arith.addf %9, %10 : vector<8x1xf32>
    %12 = math.rsqrt %11 : vector<8x1xf32>
    %13 = vector.broadcast %12 : vector<8x1xf32> to vector<8x32xf32>
    %14 = arith.mulf %5, %13 : vector<8x32xf32>
    %cst_6 = arith.constant 5.65685415 : f32
    %15 = vector.broadcast %cst_6 : f32 to vector<1x32xf32>
    %16 = arith.mulf %6, %15 : vector<1x32xf32>
    %17 = vector.broadcast %16 : vector<1x32xf32> to vector<8x32xf32>
    %18 = arith.mulf %14, %17 : vector<8x32xf32>
    %19 = arith.truncf %18 : vector<8x32xf32> to vector<8x32xbf16>
    %c0_7 = arith.constant 0 : index
    %c0_8 = arith.constant 0 : index
    %20 = vector.load %arg4[%c0_7, %c0_8] : memref<32x128xbf16, #tpu.memory_space<vmem>>, vector<32x128xbf16>
    %cst_9 = arith.constant dense<0.000000e+00> : vector<8x128xf32>
    %21 = tpu.matmul %19, %20, %cst_9 {dimension_numbers = #tpu.dot_dimension_numbers<[1], [0], [0], [1], [0, 0, 1, 1], [], []>} : vector<8x32xbf16>, vector<32x128xbf16>, vector<8x128xf32> -> vector<8x128xf32>
    %22 = vector.extract_strided_slice %21 {offsets = [0, 0], sizes = [8, 64], strides = [1, 1]} : vector<8x128xf32> to vector<8x64xf32>
    %23 = vector.extract_strided_slice %21 {offsets = [0, 64], sizes = [8, 64], strides = [1, 1]} : vector<8x128xf32> to vector<8x64xf32>
    %c0_10 = arith.constant 0 : index
    %c0_11 = arith.constant 0 : index
    %24 = vector.load %arg5[%c0_10, %c0_11] : memref<4x64xf32, #tpu.memory_space<vmem>>, vector<4x64xf32>
    %c0_12 = arith.constant 0 : index
    %c0_13 = arith.constant 0 : index
    %25 = vector.load %arg16[%c0_12, %c0_13] : memref<8x64xf32, #tpu.memory_space<vmem>>, vector<8x64xf32>
    %26 = tpu.iota {dimensions = array<i32: 0>} : vector<8x64xi32>
    %27 = vector.extract_strided_slice %24 {offsets = [3, 0], sizes = [1, 64], strides = [1, 1]} : vector<4x64xf32> to vector<1x64xf32>
    %28 = vector.broadcast %27 : vector<1x64xf32> to vector<8x64xf32>
    %29 = arith.mulf %28, %23 : vector<8x64xf32>
    %c0_14 = arith.constant 0 : index
    %c0_15 = arith.constant 0 : index
    %30 = vector.load %arg6[%c0_14, %c0_15] : memref<1x64xf32, #tpu.memory_space<vmem>>, vector<1x64xf32>
    %31 = vector.broadcast %30 : vector<1x64xf32> to vector<8x64xf32>
    %32 = arith.addf %29, %31 : vector<8x64xf32>
    %cst_16 = arith.constant 0.000000e+00 : f32
    %33 = vector.broadcast %cst_16 : f32 to vector<8x64xf32>
    %34 = vector.extract_strided_slice %24 {offsets = [2, 0], sizes = [1, 64], strides = [1, 1]} : vector<4x64xf32> to vector<1x64xf32>
    %c1_i32 = arith.constant 1 : i32
    %35 = vector.broadcast %c1_i32 : i32 to vector<8x64xi32>
    %36 = arith.cmpi sge, %3, %35 : vector<8x64xi32>
    %c1_i32_17 = arith.constant 1 : i32
    %37 = tpu.dynamic_rotate %23 by %c1_i32_17 dim 0 : vector<8x64xf32>, i32 -> vector<8x64xf32>
    %cst_18 = arith.constant 0.000000e+00 : f32
    %38 = vector.broadcast %cst_18 : f32 to vector<8x64xf32>
    %39 = arith.select %36, %37, %38 : vector<8x64xi1>, vector<8x64xf32>
    %40 = vector.broadcast %34 : vector<1x64xf32> to vector<8x64xf32>
    %41 = arith.mulf %40, %39 : vector<8x64xf32>
    %42 = arith.addf %32, %41 : vector<8x64xf32>
    %c1_i32_19 = arith.constant 1 : i32
    %43 = vector.broadcast %c1_i32_19 : i32 to vector<8x64xi32>
    %44 = arith.cmpi slt, %26, %43 : vector<8x64xi32>
    %c1_i32_20 = arith.constant 1 : i32
    %45 = tpu.dynamic_rotate %25 by %c1_i32_20 dim 0 : vector<8x64xf32>, i32 -> vector<8x64xf32>
    %cst_21 = arith.constant 0.000000e+00 : f32
    %46 = vector.broadcast %cst_21 : f32 to vector<8x64xf32>
    %47 = arith.select %44, %45, %46 : vector<8x64xi1>, vector<8x64xf32>
    %48 = vector.broadcast %34 : vector<1x64xf32> to vector<8x64xf32>
    %49 = arith.mulf %48, %47 : vector<8x64xf32>
    %50 = arith.addf %33, %49 : vector<8x64xf32>
    %51 = vector.extract_strided_slice %24 {offsets = [1, 0], sizes = [1, 64], strides = [1, 1]} : vector<4x64xf32> to vector<1x64xf32>
    %c2_i32 = arith.constant 2 : i32
    %52 = vector.broadcast %c2_i32 : i32 to vector<8x64xi32>
    %53 = arith.cmpi sge, %3, %52 : vector<8x64xi32>
    %c2_i32_22 = arith.constant 2 : i32
    %54 = tpu.dynamic_rotate %23 by %c2_i32_22 dim 0 : vector<8x64xf32>, i32 -> vector<8x64xf32>
    %cst_23 = arith.constant 0.000000e+00 : f32
    %55 = vector.broadcast %cst_23 : f32 to vector<8x64xf32>
    %56 = arith.select %53, %54, %55 : vector<8x64xi1>, vector<8x64xf32>
    %57 = vector.broadcast %51 : vector<1x64xf32> to vector<8x64xf32>
    %58 = arith.mulf %57, %56 : vector<8x64xf32>
    %59 = arith.addf %42, %58 : vector<8x64xf32>
    %c2_i32_24 = arith.constant 2 : i32
    %60 = vector.broadcast %c2_i32_24 : i32 to vector<8x64xi32>
    %61 = arith.cmpi slt, %26, %60 : vector<8x64xi32>
    %c2_i32_25 = arith.constant 2 : i32
    %62 = tpu.dynamic_rotate %25 by %c2_i32_25 dim 0 : vector<8x64xf32>, i32 -> vector<8x64xf32>
    %cst_26 = arith.constant 0.000000e+00 : f32
    %63 = vector.broadcast %cst_26 : f32 to vector<8x64xf32>
    %64 = arith.select %61, %62, %63 : vector<8x64xi1>, vector<8x64xf32>
    %65 = vector.broadcast %51 : vector<1x64xf32> to vector<8x64xf32>
    %66 = arith.mulf %65, %64 : vector<8x64xf32>
    %67 = arith.addf %50, %66 : vector<8x64xf32>
    %68 = vector.extract_strided_slice %24 {offsets = [0, 0], sizes = [1, 64], strides = [1, 1]} : vector<4x64xf32> to vector<1x64xf32>
    %c3_i32 = arith.constant 3 : i32
    %69 = vector.broadcast %c3_i32 : i32 to vector<8x64xi32>
    %70 = arith.cmpi sge, %3, %69 : vector<8x64xi32>
    %c3_i32_27 = arith.constant 3 : i32
    %71 = tpu.dynamic_rotate %23 by %c3_i32_27 dim 0 : vector<8x64xf32>, i32 -> vector<8x64xf32>
    %cst_28 = arith.constant 0.000000e+00 : f32
    %72 = vector.broadcast %cst_28 : f32 to vector<8x64xf32>
    %73 = arith.select %70, %71, %72 : vector<8x64xi1>, vector<8x64xf32>
    %74 = vector.broadcast %68 : vector<1x64xf32> to vector<8x64xf32>
    %75 = arith.mulf %74, %73 : vector<8x64xf32>
    %76 = arith.addf %59, %75 : vector<8x64xf32>
    %c3_i32_29 = arith.constant 3 : i32
    %77 = vector.broadcast %c3_i32_29 : i32 to vector<8x64xi32>
    %78 = arith.cmpi slt, %26, %77 : vector<8x64xi32>
    %c3_i32_30 = arith.constant 3 : i32
    %79 = tpu.dynamic_rotate %25 by %c3_i32_30 dim 0 : vector<8x64xf32>, i32 -> vector<8x64xf32>
    %cst_31 = arith.constant 0.000000e+00 : f32
    %80 = vector.broadcast %cst_31 : f32 to vector<8x64xf32>
    %81 = arith.select %78, %79, %80 : vector<8x64xi1>, vector<8x64xf32>
    %82 = vector.broadcast %68 : vector<1x64xf32> to vector<8x64xf32>
    %83 = arith.mulf %82, %81 : vector<8x64xf32>
    %84 = arith.addf %67, %83 : vector<8x64xf32>
    %85 = arith.addf %76, %84 : vector<8x64xf32>
    %c0_32 = arith.constant 0 : index
    %c0_33 = arith.constant 0 : index
    %86 = vector.load %arg16[%c0_32, %c0_33] : memref<8x64xf32, #tpu.memory_space<vmem>>, vector<8x64xf32>
    tpu.vector_store %arg16[%c0_32, %c0_33], %23 {strides = array<i32>} : memref<8x64xf32, #tpu.memory_space<vmem>>, vector<8x64xf32>,
    %87 = arith.truncf %85 : vector<8x64xf32> to vector<8x64xbf16>
    %c0_34 = arith.constant 0 : index
    %c0_35 = arith.constant 0 : index
    %88 = vector.load %arg7[%c0_34, %c0_35] : memref<64x128xbf16, #tpu.memory_space<vmem>>, vector<64x128xbf16>
    %cst_36 = arith.constant dense<0.000000e+00> : vector<8x128xf32>
    %89 = tpu.matmul %87, %88, %cst_36 {dimension_numbers = #tpu.dot_dimension_numbers<[1], [0], [0], [1], [0, 0, 1, 1], [], []>} : vector<8x64xbf16>, vector<64x128xbf16>, vector<8x128xf32> -> vector<8x128xf32>
    %c0_37 = arith.constant 0 : index
    %c0_38 = arith.constant 0 : index
    %90 = vector.load %arg8[%c0_37, %c0_38] : memref<1x128xf32, #tpu.memory_space<vmem>>, vector<1x128xf32>
    %91 = vector.broadcast %90 : vector<1x128xf32> to vector<8x128xf32>
    %92 = arith.addf %89, %91 : vector<8x128xf32>
    %c0_39 = arith.constant 0 : index
    %c0_40 = arith.constant 0 : index
    %93 = vector.load %arg9[%c0_39, %c0_40] : memref<1x64xf32, #tpu.memory_space<vmem>>, vector<1x64xf32>
    %94 = vector.extract_strided_slice %92 {offsets = [0, 0], sizes = [8, 64], strides = [1, 1]} : vector<8x128xf32> to vector<8x64xf32>
    %95 = arith.negf %94 : vector<8x64xf32>
    %96 = math.exp %95 : vector<8x64xf32>
    %cst_41 = arith.constant 1.000000e+00 : f32
    %97 = vector.broadcast %cst_41 : f32 to vector<8x64xf32>
    %98 = arith.addf %97, %96 : vector<8x64xf32>
    %99 = arith.divf %97, %98 : vector<8x64xf32>
    %100 = vector.broadcast %93 : vector<1x64xf32> to vector<8x64xf32>
    %101 = arith.mulf %100, %99 : vector<8x64xf32>
    %102 = math.exp %101 : vector<8x64xf32>
    %103 = arith.mulf %102, %102 : vector<8x64xf32>
    %cst_42 = arith.constant 1.000000e+00 : f32
    %104 = vector.broadcast %cst_42 : f32 to vector<8x64xf32>
    %105 = arith.subf %104, %103 : vector<8x64xf32>
    %cst_43 = arith.constant 9.99999997E-7 : f32
    %106 = vector.broadcast %cst_43 : f32 to vector<8x64xf32>
    %107 = arith.addf %105, %106 : vector<8x64xf32>
    %108 = math.sqrt %107 : vector<8x64xf32>
    %109 = vector.extract_strided_slice %92 {offsets = [0, 64], sizes = [8, 64], strides = [1, 1]} : vector<8x128xf32> to vector<8x64xf32>
    %110 = arith.negf %109 : vector<8x64xf32>
    %111 = math.exp %110 : vector<8x64xf32>
    %cst_44 = arith.constant 1.000000e+00 : f32
    %112 = vector.broadcast %cst_44 : f32 to vector<8x64xf32>
    %113 = arith.addf %112, %111 : vector<8x64xf32>
    %114 = arith.divf %112, %113 : vector<8x64xf32>
    %115 = arith.mulf %108, %114 : vector<8x64xf32>
    %116 = arith.mulf %115, %85 : vector<8x64xf32>
    %c1_i32_45 = arith.constant 1 : i32
    %117 = vector.broadcast %c1_i32_45 : i32 to vector<8x64xi32>
    %118 = arith.cmpi sge, %3, %117 : vector<8x64xi32>
    %c1_i32_46 = arith.constant 1 : i32
    %119 = tpu.dynamic_rotate %116 by %c1_i32_46 dim 0 : vector<8x64xf32>, i32 -> vector<8x64xf32>
    %120 = arith.mulf %102, %119 : vector<8x64xf32>
    %121 = arith.addf %116, %120 : vector<8x64xf32>
    %122 = arith.select %118, %121, %116 : vector<8x64xi1>, vector<8x64xf32>
    %c1_i32_47 = arith.constant 1 : i32
    %123 = tpu.dynamic_rotate %102 by %c1_i32_47 dim 0 : vector<8x64xf32>, i32 -> vector<8x64xf32>
    %124 = arith.mulf %102, %123 : vector<8x64xf32>
    %125 = arith.select %118, %124, %102 : vector<8x64xi1>, vector<8x64xf32>
    %c2_i32_48 = arith.constant 2 : i32
    %126 = vector.broadcast %c2_i32_48 : i32 to vector<8x64xi32>
    %127 = arith.cmpi sge, %3, %126 : vector<8x64xi32>
    %c2_i32_49 = arith.constant 2 : i32
    %128 = tpu.dynamic_rotate %122 by %c2_i32_49 dim 0 : vector<8x64xf32>, i32 -> vector<8x64xf32>
    %129 = arith.mulf %125, %128 : vector<8x64xf32>
    %130 = arith.addf %122, %129 : vector<8x64xf32>
    %131 = arith.select %127, %130, %122 : vector<8x64xi1>, vector<8x64xf32>
    %c2_i32_50 = arith.constant 2 : i32
    %132 = tpu.dynamic_rotate %125 by %c2_i32_50 dim 0 : vector<8x64xf32>, i32 -> vector<8x64xf32>
    %133 = arith.mulf %125, %132 : vector<8x64xf32>
    %134 = arith.select %127, %133, %125 : vector<8x64xi1>, vector<8x64xf32>
    %c4_i32 = arith.constant 4 : i32
    %135 = vector.broadcast %c4_i32 : i32 to vector<8x64xi32>
    %136 = arith.cmpi sge, %3, %135 : vector<8x64xi32>
    %c4_i32_51 = arith.constant 4 : i32
    %137 = tpu.dynamic_rotate %131 by %c4_i32_51 dim 0 : vector<8x64xf32>, i32 -> vector<8x64xf32>
    %138 = arith.mulf %134, %137 : vector<8x64xf32>
    %139 = arith.addf %131, %138 : vector<8x64xf32>
    %140 = arith.select %136, %139, %131 : vector<8x64xi1>, vector<8x64xf32>
    %c4_i32_52 = arith.constant 4 : i32
    %141 = tpu.dynamic_rotate %134 by %c4_i32_52 dim 0 : vector<8x64xf32>, i32 -> vector<8x64xf32>
    %142 = arith.mulf %134, %141 : vector<8x64xf32>
    %143 = arith.select %136, %142, %134 : vector<8x64xi1>, vector<8x64xf32>
    %c0_53 = arith.constant 0 : index
    %c0_54 = arith.constant 0 : index
    %144 = vector.load %arg15[%c0_53, %c0_54] : memref<1x64xf32, #tpu.memory_space<vmem>>, vector<1x64xf32>
    %145 = vector.broadcast %144 : vector<1x64xf32> to vector<8x64xf32>
    %146 = arith.mulf %143, %145 : vector<8x64xf32>
    %147 = arith.addf %140, %146 : vector<8x64xf32>
    %148 = vector.extract_strided_slice %147 {offsets = [7, 0], sizes = [1, 64], strides = [1, 1]} : vector<8x64xf32> to vector<1x64xf32>
    %c0_55 = arith.constant 0 : index
    %c0_56 = arith.constant 0 : index
    %149 = vector.load %arg15[%c0_55, %c0_56] : memref<1x64xf32, #tpu.memory_space<vmem>>, vector<1x64xf32>
    tpu.vector_store %arg15[%c0_55, %c0_56], %148 {strides = array<i32>} : memref<1x64xf32, #tpu.memory_space<vmem>>, vector<1x64xf32>,
    %cst_57 = arith.constant 5.000000e-01 : f32
    %150 = vector.broadcast %cst_57 : f32 to vector<8x64xf32>
    %151 = arith.mulf %150, %22 : vector<8x64xf32>
    %cst_58 = arith.constant 4.471500e-02 : f32
    %152 = vector.broadcast %cst_58 : f32 to vector<8x64xf32>
    %153 = arith.mulf %152, %22 : vector<8x64xf32>
    %154 = arith.mulf %153, %22 : vector<8x64xf32>
    %155 = arith.mulf %154, %22 : vector<8x64xf32>
    %156 = arith.addf %22, %155 : vector<8x64xf32>
    %cst_59 = arith.constant 0.797884583 : f32
    %157 = vector.broadcast %cst_59 : f32 to vector<8x64xf32>
    %158 = arith.mulf %157, %156 : vector<8x64xf32>
    %159 = math.tanh %158 : vector<8x64xf32>
    %cst_60 = arith.constant 1.000000e+00 : f32
    %160 = vector.broadcast %cst_60 : f32 to vector<8x64xf32>
    %161 = arith.addf %160, %159 : vector<8x64xf32>
    %162 = arith.mulf %151, %161 : vector<8x64xf32>
    %163 = arith.mulf %162, %147 : vector<8x64xf32>
    %164 = arith.truncf %163 : vector<8x64xf32> to vector<8x64xbf16>
    %c0_61 = arith.constant 0 : index
    %c0_62 = arith.constant 0 : index
    %165 = vector.load %arg10[%c0_61, %c0_62] : memref<64x32xbf16, #tpu.memory_space<vmem>>, vector<64x32xbf16>
    %cst_63 = arith.constant dense<0.000000e+00> : vector<8x32xf32>
    %166 = tpu.matmul %164, %165, %cst_63 {dimension_numbers = #tpu.dot_dimension_numbers<[1], [0], [0], [1], [0, 0, 1, 1], [], []>} : vector<8x64xbf16>, vector<64x32xbf16>, vector<8x32xf32> -> vector<8x32xf32>
    %167 = arith.addf %5, %166 : vector<8x32xf32>
    %c0_64 = arith.constant 0 : index
    %c0_65 = arith.constant 0 : index
    %168 = vector.load %arg11[%c0_64, %c0_65] : memref<1x32xf32, #tpu.memory_space<vmem>>, vector<1x32xf32>
    %169 = arith.mulf %167, %167 : vector<8x32xf32>
    %cst_66 = arith.constant dense<0.000000e+00> : vector<8xf32>
    %170 = vector.multi_reduction <add>, %169, %cst_66 [1] : vector<8x32xf32> to vector<8xf32>
    %171 = vector.shape_cast %170 : vector<8xf32> to vector<8x1xf32>
    %cst_67 = arith.constant 1.000000e-30 : f32
    %172 = vector.broadcast %cst_67 : f32 to vector<8x1xf32>
    %173 = arith.addf %171, %172 : vector<8x1xf32>
    %174 = math.rsqrt %173 : vector<8x1xf32>
    %175 = vector.broadcast %174 : vector<8x1xf32> to vector<8x32xf32>
    %176 = arith.mulf %167, %175 : vector<8x32xf32>
    %cst_68 = arith.constant 5.65685415 : f32
    %177 = vector.broadcast %cst_68 : f32 to vector<1x32xf32>
    %178 = arith.mulf %168, %177 : vector<1x32xf32>
    %179 = vector.broadcast %178 : vector<1x32xf32> to vector<8x32xf32>
    %180 = arith.mulf %176, %179 : vector<8x32xf32>
    %181 = arith.truncf %180 : vector<8x32xf32> to vector<8x32xbf16>
    %c0_69 = arith.constant 0 : index
    %c0_70 = arith.constant 0 : index
    %182 = vector.load %arg12[%c0_69, %c0_70] : memref<32x128xbf16, #tpu.memory_space<vmem>>, vector<32x128xbf16>
    %cst_71 = arith.constant dense<0.000000e+00> : vector<8x128xf32>
    %183 = tpu.matmul %181, %182, %cst_71 {dimension_numbers = #tpu.dot_dimension_numbers<[1], [0], [0], [1], [0, 0, 1, 1], [], []>} : vector<8x32xbf16>, vector<32x128xbf16>, vector<8x128xf32> -> vector<8x128xf32>
    %184 = vector.extract_strided_slice %183 {offsets = [0, 0], sizes = [8, 64], strides = [1, 1]} : vector<8x128xf32> to vector<8x64xf32>
    %cst_72 = arith.constant 5.000000e-01 : f32
    %185 = vector.broadcast %cst_72 : f32 to vector<8x64xf32>
    %186 = arith.mulf %185, %184 : vector<8x64xf32>
    %cst_73 = arith.constant 4.471500e-02 : f32
    %187 = vector.broadcast %cst_73 : f32 to vector<8x64xf32>
    %188 = arith.mulf %187, %184 : vector<8x64xf32>
    %189 = arith.mulf %188, %184 : vector<8x64xf32>
    %190 = arith.mulf %189, %184 : vector<8x64xf32>
    %191 = arith.addf %184, %190 : vector<8x64xf32>
    %cst_74 = arith.constant 0.797884583 : f32
    %192 = vector.broadcast %cst_74 : f32 to vector<8x64xf32>
    %193 = arith.mulf %192, %191 : vector<8x64xf32>
    %194 = math.tanh %193 : vector<8x64xf32>
    %cst_75 = arith.constant 1.000000e+00 : f32
    %195 = vector.broadcast %cst_75 : f32 to vector<8x64xf32>
    %196 = arith.addf %195, %194 : vector<8x64xf32>
    %197 = arith.mulf %186, %196 : vector<8x64xf32>
    %198 = vector.extract_strided_slice %183 {offsets = [0, 64], sizes = [8, 64], strides = [1, 1]} : vector<8x128xf32> to vector<8x64xf32>
    %199 = arith.mulf %197, %198 : vector<8x64xf32>
    %200 = arith.truncf %199 : vector<8x64xf32> to vector<8x64xbf16>
    %c0_76 = arith.constant 0 : index
    %c0_77 = arith.constant 0 : index
    %201 = vector.load %arg13[%c0_76, %c0_77] : memref<64x32xbf16, #tpu.memory_space<vmem>>, vector<64x32xbf16>
    %cst_78 = arith.constant dense<0.000000e+00> : vector<8x32xf32>
    %202 = tpu.matmul %200, %201, %cst_78 {dimension_numbers = #tpu.dot_dimension_numbers<[1], [0], [0], [1], [0, 0, 1, 1], [], []>} : vector<8x64xbf16>, vector<64x32xbf16>, vector<8x32xf32> -> vector<8x32xf32>
    %203 = arith.addf %167, %202 : vector<8x32xf32>
    %c0_79 = arith.constant 0 : index
    %c0_80 = arith.constant 0 : index
    %c0_81 = arith.constant 0 : index
    %204 = vector.load %arg14[%c0_79, %c0_80, %c0_81] : memref<1x8x32xf32, #tpu.memory_space<vmem>>, vector<1x8x32xf32>
    %205 = vector.shape_cast %204 : vector<1x8x32xf32> to vector<8x32xf32>
    %206 = vector.shape_cast %203 : vector<8x32xf32> to vector<1x8x32xf32>
    tpu.vector_store %arg14[%c0_79, %c0_80, %c0_81], %206 {strides = array<i32>} : memref<1x8x32xf32, #tpu.memory_space<vmem>>, vector<1x8x32xf32>,
    return
  }
  func.func @transform_0(%arg0: i32, %arg1: i32) -> (i32, i32, i32) {
    %c0_i32 = arith.constant 0 : i32
    %c0_i32_0 = arith.constant 0 : i32
    return %arg0, %arg1, %c0_i32 : i32, i32, i32
  }
  func.func @transform_1(%arg0: i32, %arg1: i32) -> (i32, i32) {
    %c0_i32 = arith.constant 0 : i32
    %c0_i32_0 = arith.constant 0 : i32
    %c0_i32_1 = arith.constant 0 : i32
    return %c0_i32, %c0_i32_0 : i32, i32
  }
  func.func @transform_2(%arg0: i32, %arg1: i32) -> (i32, i32) {
    %c0_i32 = arith.constant 0 : i32
    %c0_i32_0 = arith.constant 0 : i32
    %c0_i32_1 = arith.constant 0 : i32
    return %c0_i32, %c0_i32_0 : i32, i32
  }
  func.func @transform_3(%arg0: i32, %arg1: i32) -> (i32, i32) {
    %c0_i32 = arith.constant 0 : i32
    %c0_i32_0 = arith.constant 0 : i32
    %c0_i32_1 = arith.constant 0 : i32
    return %c0_i32, %c0_i32_0 : i32, i32
  }
  func.func @transform_4(%arg0: i32, %arg1: i32) -> (i32, i32) {
    %c0_i32 = arith.constant 0 : i32
    %c0_i32_0 = arith.constant 0 : i32
    %c0_i32_1 = arith.constant 0 : i32
    return %c0_i32, %c0_i32_0 : i32, i32
  }
  func.func @transform_5(%arg0: i32, %arg1: i32) -> (i32, i32) {
    %c0_i32 = arith.constant 0 : i32
    %c0_i32_0 = arith.constant 0 : i32
    %c0_i32_1 = arith.constant 0 : i32
    return %c0_i32, %c0_i32_0 : i32, i32
  }
  func.func @transform_6(%arg0: i32, %arg1: i32) -> (i32, i32) {
    %c0_i32 = arith.constant 0 : i32
    %c0_i32_0 = arith.constant 0 : i32
    %c0_i32_1 = arith.constant 0 : i32
    return %c0_i32, %c0_i32_0 : i32, i32
  }
  func.func @transform_7(%arg0: i32, %arg1: i32) -> (i32, i32) {
    %c0_i32 = arith.constant 0 : i32
    %c0_i32_0 = arith.constant 0 : i32
    %c0_i32_1 = arith.constant 0 : i32
    return %c0_i32, %c0_i32_0 : i32, i32
  }
  func.func @transform_8(%arg0: i32, %arg1: i32) -> (i32, i32) {
    %c0_i32 = arith.constant 0 : i32
    %c0_i32_0 = arith.constant 0 : i32
    %c0_i32_1 = arith.constant 0 : i32
    return %c0_i32, %c0_i32_0 : i32, i32
  }
  func.func @transform_9(%arg0: i32, %arg1: i32) -> (i32, i32) {
    %c0_i32 = arith.constant 0 : i32
    %c0_i32_0 = arith.constant 0 : i32
    %c0_i32_1 = arith.constant 0 : i32
    return %c0_i32, %c0_i32_0 : i32, i32
  }
  func.func @transform_10(%arg0: i32, %arg1: i32) -> (i32, i32) {
    %c0_i32 = arith.constant 0 : i32
    %c0_i32_0 = arith.constant 0 : i32
    %c0_i32_1 = arith.constant 0 : i32
    return %c0_i32, %c0_i32_0 : i32, i32
  }
  func.func @transform_11(%arg0: i32, %arg1: i32) -> (i32, i32) {
    %c0_i32 = arith.constant 0 : i32
    %c0_i32_0 = arith.constant 0 : i32
    %c0_i32_1 = arith.constant 0 : i32
    return %c0_i32, %c0_i32_0 : i32, i32
  }
  func.func @transform_12(%arg0: i32, %arg1: i32) -> (i32, i32, i32) {
    %c0_i32 = arith.constant 0 : i32
    %c0_i32_0 = arith.constant 0 : i32
    return %arg0, %arg1, %c0_i32 : i32, i32, i32
  }
}

</mosaic_0001>

<bundles_post_ra>
// kernel: tpu_custom_call.1
= control target key start
LH: loop header
LB: loop body
LE: loop exit
PB: predicated region body
PF: predicated region fallthrough
CT: control target
= control target key end

     0   :  { %s2315_s0 = inlined_call_operand.vmem [shape: f32[2,32,32], index: 0, kind: input, shape index: {}]   ;;  %s2316_s1 = inlined_call_operand.vmem [shape: f32[1,32], index: 1, kind: input, shape index: {}]   ;;  %s2317_s2 = inlined_call_operand.hbm [shape: bf16[32,128], index: 2, kind: input, shape index: {}]   ;;  %s2318_s3 = inlined_call_operand.hbm [shape: f32[4,64], index: 3, kind: input, shape index: {}]   ;;  %s2319_s4 = inlined_call_operand.vmem [shape: f32[1,64], index: 4, kind: input, shape index: {}]   ;;  %s2320_s5 = inlined_call_operand.vmem [shape: bf16[64,128], index: 5, kind: input, shape index: {}]   ;;  %s2321_s6 = inlined_call_operand.hbm [shape: f32[1,128], index: 6, kind: input, shape index: {}]   ;;  %s2322_s7 = inlined_call_operand.hbm [shape: f32[1,64], index: 7, kind: input, shape index: {}]   ;;  %s2323_s8 = inlined_call_operand.vmem [shape: bf16[64,32], index: 8, kind: input, shape index: {}]   ;;  %s2324_s9 = inlined_call_operand.hbm [shape: f32[1,32], index: 9, kind: input, shape index: {}]   ;;  %s2325_s10 = inlined_call_operand.hbm [shape: bf16[32,128], index: 10, kind: input, shape index: {}]   ;;  %s2326_s11 = inlined_call_operand.vmem [shape: bf16[64,32], index: 11, kind: input, shape index: {}]   ;;  %s2327_s12 = inlined_call_operand.hbm [shape: f32[2,32,32], index: 12, kind: output, shape index: {}]  }
   0x1   :  { %2344 = sst [smem:[#allocation31_spill]] %s2318_s3 }
   0x2   :  { %2345 = sst [smem:[#allocation32_spill]] %s2322_s7 }
   0x3   :  { %2346 = sst [smem:[#allocation33_spill]] %s2327_s12 }
   0x4   :  { %17 = vsyncpa [#allocation5], 0 }
   0x5   :  { %18 = vsyncpa [#allocation8], 0 }
   0x6   :  { %19 = vsyncpa [#allocation11], 0 }
   0x7   :  { %20 = vsyncpa [#allocation14], 0 }
   0x8   :  { %21 = vsyncpa [#allocation6], 0 }
   0x9   :  { %23 = vsyncpa [#allocation6 + $0x1], 0  ;;  %s1880_s21 = smov 0   ;;  %s1882_s22 = smov 0  }
   0xa   :  { %s1884_s23 = smov 0   ;;  %s1886_s24 = smov 0  }
   0xb   :  { %s1888_s25 = smov 0   ;;  %s1890_s26 = smov 0  }
   0xc   :  { %s1892_s27 = smov 0   ;;  %s1894_s28 = smov 0  }
   0xd LB: > { %2347 = sst [smem:[#allocation21_spill]] %s1772_s21  ;;  %s1227_s29 = sadd.s32 4294967295, %s1800_s28   ;;  %s1800_s28 = sphi %s1894_s28, %s29_s28   ;;  %s1796_s27 = sphi %s1892_s27, %s2379_s27   ;;  %s1792_s26 = sphi %s1890_s26, %s2378_s26   ;;  %s1788_s25 = sphi %s1888_s25, %s2382_s25   ;;  %s1784_s24 = sphi %s1886_s24, %s2376_s24   ;;  %s1780_s23 = sphi %s1884_s23, %s2375_s23   ;;  %s1776_s22 = sphi %s1882_s22, %s2381_s22   ;;  %s1772_s21 = sphi %s1880_s21, %s2380_s21  }
   0xe   : > { %2348 = sst [smem:[#allocation22_spill]] %s1780_s23  ;;  %s1228_s30 = sadd.s32 4294967294, %s1800_s28  }
   0xf   : > { %2349 = sst [smem:[#allocation23_spill]] %s1792_s26  ;;  %s38_s13 = sadd.s32 1, %s1792_s26 }
  0x10   : > { %2350 = sst [smem:[#allocation24_spill]] %s1796_s27  ;;  %s41_s14 = sadd.s32 1, %s1796_s27 }
  0x11   : > { %2351 = sst [smem:[#allocation25_spill]] %s1800_s28  ;;  %p39_p0 = scmp.ge.s32.totalorder %s38_s13, 4 }
  0x12   : > { %s309_s15 = sadd.s32 1, %s1780_s23  ;;  %p319_p1 = scmp.ne.s32.totalorder %s1780_s23, %s1776_s22 }
  0x13   : > { %p320_p2 = scmp.eq.s32.totalorder %s1227_s29, 7  ;;  %s2384_s13 = smov (%p39_p0, %s38_s13), 0 }
  0x14   : > { %2352 = sst [smem:[#allocation26_spill]] %s2384_s13  ;;  %s2386_s14 = smov (!%p39_p0, %s41_s14), %s1796_s27 }
  0x15   : > { %s305_s16 = ssub.s32 %s1792_s26, %s2384_s13  ;;  %p1932_p3 = por %p320_p2, %p319_p1 }
  0x16   : > { %p43_p4 = scmp.ge.s32.totalorder %s2386_s14, 2  ;;  %p325_p5 = scmp.ne.s32.totalorder %s1776_s22, %s1772_s21 }
  0x17   : > { %s2353_s17 = scalar_select %p1932_p3, 1, 0 }
  0x18   : > { %p326_p6 = scmp.eq.s32.totalorder %s1228_s30, 7  ;;  %p1229_p7 = scmp.ge.s32.totalorder %s1800_s28, 1 }
  0x19   : > { %2354 = sst [smem:[#allocation27_spill]] %s2353_s17  ;;  %s2388_s14 = smov (%p43_p4, %s2386_s14), 0 }
  0x1a   : > { %2355 = sst [smem:[#allocation28_spill]] %s2388_s14  ;;  %p1941_p8 = por %p326_p6, %p325_p5 }
  0x1b   : > { %p333_p9 = scmp.lt.s32.totalorder %s1800_s28, 9  ;;  %s304_s19 = ssub.s32 %s1796_s27, %s2388_s14 }
  0x1c   : > { %s2356_s18 = scalar_select %p1941_p8, 1, 0 }
  0x1d   : > { %s306_s20 = sor.u32 %s305_s16, %s304_s19  ;;  %p1948_p10 = pnand %p1229_p7, %p333_p9 }
  0x1e   : > { %2357 = sst [smem:[#allocation29_spill]] %s2356_s18  ;;  %p307_p11 = scmp.eq.s32.totalorder %s306_s20, 0 }
  0x1f   : > { %s2358_s13 = scalar_select %p1948_p10, 1, 0 }
  0x20   : > { %p1952_p12 = scmp.eq.s32.totalorder %s1227_s29, 0  ;;  %p1378_p13 = pneg %p1948_p10 }
  0x21   : > { %s1959_s30 = scalar_select %p307_p11, %s1780_s23, %s309_s15  }
  0x22   : > { %s2359_s26 = scalar_select %p1952_p12, 1, 0 }
  0x23   : > { %2360 = sst [smem:[#allocation30_spill]] %s1959_s30  ;;  %p1963_p0 = pnand %p1952_p12, %p1378_p13 }
  0x24   : > { %s1802_s16 = smov [#allocation7]   ;;  %s1803_s14 = smov [#allocation10]  }
  0x25   : > { %s362_s19 = sshll.u32 %s1802_s16, 4  ;;  %s390_s20 = sshll.u32 %s1803_s14, 4  ;;  %s363_s19 = int_to_ptr.vmem [resolvable:$true] %s362_s19  ;;  %s391_s20 = int_to_ptr.vmem [resolvable:$true] %s390_s20 }
  0x26   : > { %s2362_s3 = sld [smem:[#allocation31_spill]]  ;;  %p1975_p2 = pneg %p1963_p0 }
  0x2c   : > { %s1522_s21 = scalar_lea.hbm %s2362_s3, 64 }
  0x2d   : > { %p1523_p1 = scmp.ne.s32.totalorder %s2362_s3, %s1522_s21  ;;  %p1529_p6 = scmp.lt.u32.totalorder %s1522_s21, %s2362_s3 }
  0x2f   : > { %p1525_p4 = pnand %p1975_p2, %p1523_p1 }
  0x31   : > { %p1526_p5 = pneg %p1525_p4 }
  0x33   : > { %p1531_p7 = pnand %p1529_p6, %p1526_p5 }
  0x35   : > { %1534 = shalt.err (!%p1531_p7)
}
  0x36   : > { %s1535_s27 = scalar_lea.vmem %s363_s19, 64  ;;  %p1543_p8 = scmp.lt.s32.totalorder %s363_s19, %s363_s19 }
  0x37   : > { %p1536_p9 = scmp.ne.s32.totalorder %s363_s19, %s1535_s27  ;;  %p1544_p3 = scmp.lt.s32.totalorder %s1535_s27, %s1535_s27 }
  0x39   : > { %p1538_p11 = pnand %p1536_p9, %p1975_p2  ;;  %p1545_p12 = por %p1544_p3, %p1543_p8 }
  0x3b   : > { %p1539_p13 = pneg %p1538_p11 }
  0x3d   : > { %p1546_p10 = pnand %p1545_p12, %p1539_p13 }
  0x3f   : > { %1549 = shalt.err (!%p1546_p10)
}
  0x40   : > { %1384 = dma.hbm_to_vmem [thread:$0]  (!%p1963_p0), %s2362_s3, 64, %s363_s19, [#allocation8]  }
  0x41   : > { %s2364_s7 = sld [smem:[#allocation32_spill]] }
  0x47   : > { %s1550_s30 = scalar_lea.hbm %s2364_s7, 16 }
  0x48   : > { %p1551_p1 = scmp.ne.s32.totalorder %s2364_s7, %s1550_s30  ;;  %p1557_p10 = scmp.lt.u32.totalorder %s1550_s30, %s2364_s7 }
  0x4a   : > { %p1553_p3 = pnand %p1551_p1, %p1975_p2 }
  0x4c   : > { %p1554_p8 = pneg %p1553_p3 }
  0x4e   : > { %p1559_p12 = pnand %p1557_p10, %p1554_p8 }
  0x50   : > { %1562 = shalt.err (!%p1559_p12)
}
  0x51   : > { %s1563_s12 = scalar_lea.vmem %s391_s20, 16  ;;  %s1570_s19 = scalar_lea.vmem %s391_s20, 32 }
  0x52   : > { %p1564_p4 = scmp.ne.s32.totalorder %s391_s20, %s1563_s12  ;;  %p1571_p7 = scmp.lt.s32.totalorder %s391_s20, %s391_s20 }
  0x53   : > { %p1572_p9 = scmp.lt.s32.totalorder %s1570_s19, %s1563_s12 }
  0x54   : > { %p1566_p5 = pnand %p1564_p4, %p1975_p2 }
  0x55   : > { %p1573_p11 = por %p1572_p9, %p1571_p7 }
  0x56   : > { %p1567_p6 = pneg %p1566_p5 }
  0x58   : > { %p1574_p13 = pnand %p1573_p11, %p1567_p6 }
  0x5a   : > { %1577 = shalt.err (!%p1574_p13)
}
  0x5b   : > { %1390 = dma.hbm_to_vmem [thread:$0]  (!%p1963_p0), %s2364_s7, 16, %s391_s20, [#allocation11]  }
  0x5c   : > { %s1804_s23 = smov [#allocation4]   ;;  %s1578_s16 = scalar_lea.hbm %s2317_s2, 256 }
  0x5d   : > { %s348_s14 = sshll.u32 %s1804_s23, 4  ;;  %p1579_p1 = scmp.ne.s32.totalorder %s2317_s2, %s1578_s16  ;;  %s349_s14 = int_to_ptr.vmem [resolvable:$true] %s348_s14 }
  0x5e   : > { %p1585_p10 = scmp.lt.u32.totalorder %s1578_s16, %s2317_s2 }
  0x5f   : > { %p1581_p3 = pnand %p1579_p1, %p1975_p2 }
  0x61   : > { %p1582_p8 = pneg %p1581_p3 }
  0x63   : > { %p1587_p12 = pnand %p1585_p10, %p1582_p8 }
  0x65   : > { %1590 = shalt.err (!%p1587_p12)
}
  0x66   : > { %s1591_s20 = scalar_lea.vmem %s349_s14, 256  ;;  %p1599_p7 = scmp.lt.s32.totalorder %s349_s14, %s349_s14 }
  0x67   : > { %p1592_p4 = scmp.ne.s32.totalorder %s349_s14, %s1591_s20  ;;  %p1600_p9 = scmp.lt.s32.totalorder %s1591_s20, %s1591_s20 }
  0x69   : > { %p1594_p5 = pnand %p1592_p4, %p1975_p2  ;;  %p1601_p11 = por %p1600_p9, %p1599_p7 }
  0x6b   : > { %p1595_p6 = pneg %p1594_p5 }
  0x6d   : > { %p1602_p13 = pnand %p1601_p11, %p1595_p6 }
  0x6f   : > { %1605 = shalt.err (!%p1602_p13)
}
  0x70   : > { %s1805_s3 = smov 64   ;;  %s1806_s28 = smov 4  }
  0x71   : > { %1381 = dma.hbm_to_vmem [thread:$0]  (!%p1963_p0), %s2317_s2, 256, %s349_s14, [#allocation5], %s1805_s3, %s1805_s3, %s1806_s28  }
  0x72   : > { %s1807_s30 = smov [#allocation9]   ;;  %s1808_s16 = smov [#allocation12]  }
  0x73   : > { %s379_s29 = sshll.u32 %s1807_s30, 4  ;;  %s404_s27 = sshll.u32 %s1808_s16, 4  ;;  %s380_s29 = int_to_ptr.vmem [resolvable:$true] %s379_s29  ;;  %s2030_s27 = int_to_ptr.vmem [resolvable:$true] %s404_s27 }
  0x74   : > { %s1606_s20 = scalar_lea.hbm %s2321_s6, 16 }
  0x75   : > { %p1607_p1 = scmp.ne.s32.totalorder %s2321_s6, %s1606_s20  ;;  %p1613_p10 = scmp.lt.u32.totalorder %s1606_s20, %s2321_s6 }
  0x77   : > { %p1609_p3 = pnand %p1607_p1, %p1975_p2 }
  0x79   : > { %p1610_p8 = pneg %p1609_p3 }
  0x7b   : > { %p1615_p12 = pnand %p1613_p10, %p1610_p8 }
  0x7d   : > { %1618 = shalt.err (!%p1615_p12)
}
  0x7e   : > { %s1619_s23 = scalar_lea.vmem %s380_s29, 16  ;;  %s1626_s30 = scalar_lea.vmem %s380_s29, 32 }
  0x7f   : > { %p1620_p4 = scmp.ne.s32.totalorder %s380_s29, %s1619_s23  ;;  %p1627_p7 = scmp.lt.s32.totalorder %s380_s29, %s380_s29 }
  0x80   : > { %p1628_p9 = scmp.lt.s32.totalorder %s1626_s30, %s1619_s23 }
  0x81   : > { %p1622_p5 = pnand %p1620_p4, %p1975_p2 }
  0x82   : > { %p1629_p11 = por %p1628_p9, %p1627_p7 }
  0x83   : > { %p1623_p6 = pneg %p1622_p5 }
  0x85   : > { %p1630_p13 = pnand %p1629_p11, %p1623_p6 }
  0x87   : > { %1633 = shalt.err (!%p1630_p13)
}
  0x88   : > { %1387 = dma.hbm_to_vmem [thread:$0]  (!%p1963_p0), %s2321_s6, 16, %s380_s29, [#allocation8]  }
  0x89   : > { %s1634_s19 = scalar_lea.hbm %s2324_s9, 16 }
  0x8a   : > { %p1635_p1 = scmp.ne.s32.totalorder %s2324_s9, %s1634_s19  ;;  %p1641_p10 = scmp.lt.u32.totalorder %s1634_s19, %s2324_s9 }
  0x8c   : > { %p1637_p3 = pnand %p1635_p1, %p1975_p2 }
  0x8e   : > { %p1638_p8 = pneg %p1637_p3 }
  0x90   : > { %p1643_p12 = pnand %p1641_p10, %p1638_p8 }
  0x92   : > { %1646 = shalt.err (!%p1643_p12)
}
  0x93   : > { %s1647_s29 = scalar_lea.vmem %s2030_s27, 16  ;;  %s1654_s30 = scalar_lea.vmem %s2030_s27, 32 }
  0x94   : > { %p1648_p4 = scmp.ne.s32.totalorder %s2030_s27, %s1647_s29  ;;  %p1655_p7 = scmp.lt.s32.totalorder %s2030_s27, %s2030_s27 }
  0x95   : > { %p1656_p9 = scmp.lt.s32.totalorder %s1654_s30, %s1647_s29 }
  0x96   : > { %p1650_p5 = pnand %p1648_p4, %p1975_p2 }
  0x97   : > { %p1657_p11 = por %p1656_p9, %p1655_p7 }
  0x98   : > { %p1651_p6 = pneg %p1650_p5 }
  0x9a   : > { %p1658_p13 = pnand %p1657_p11, %p1651_p6 }
  0x9c   : > { %1661 = shalt.err (!%p1658_p13)
}
  0x9d   : > { %1393 = dma.hbm_to_vmem [thread:$0]  (!%p1963_p0), %s2324_s9, 16, %s2030_s27, [#allocation11]  }
  0x9e   : > { %s1809_s16 = smov [#allocation13]   ;;  %s1662_s21 = scalar_lea.hbm %s2325_s10, 256 }
  0x9f   : > { %s414_s12 = sshll.u32 %s1809_s16, 4  ;;  %p1663_p1 = scmp.ne.s32.totalorder %s2325_s10, %s1662_s21  ;;  %s415_s12 = int_to_ptr.vmem [resolvable:$true] %s414_s12 }
  0xa0   : > { %p1669_p10 = scmp.lt.u32.totalorder %s1662_s21, %s2325_s10 }
  0xa1   : > { %p1665_p3 = pnand %p1663_p1, %p1975_p2 }
  0xa3   : > { %p1666_p8 = pneg %p1665_p3 }
  0xa5   : > { %p1671_p12 = pnand %p1669_p10, %p1666_p8 }
  0xa7   : > { %1674 = shalt.err (!%p1671_p12)
}
  0xa8   : > { %s1675_s27 = scalar_lea.vmem %s415_s12, 256  ;;  %p1683_p7 = scmp.lt.s32.totalorder %s415_s12, %s415_s12 }
  0xa9   : > { %p1676_p4 = scmp.ne.s32.totalorder %s415_s12, %s1675_s27  ;;  %p1684_p9 = scmp.lt.s32.totalorder %s1675_s27, %s1675_s27 }
  0xab   : > { %p1678_p5 = pnand %p1676_p4, %p1975_p2  ;;  %p1685_p11 = por %p1684_p9, %p1683_p7 }
  0xad   : > { %p1679_p6 = pneg %p1678_p5 }
  0xaf   : > { %p1686_p13 = pnand %p1685_p11, %p1679_p6 }
  0xb1   : > { %1689 = shalt.err (!%p1686_p13)
}
  0xb2   : > { %1396 = dma.hbm_to_vmem [thread:$0]  (!%p1963_p0), %s2325_s10, 256, %s415_s12, [#allocation14], %s1805_s3, %s1805_s3, %s1806_s28  }
  0xb3   : > { %p2365_p1 = scmp.ne.s32.totalorder %s2358_s13, 0 }
  0xb4   : > { %p2366_p2 = scmp.ne.s32.totalorder (!%p2365_p1), %s2359_s26, 0 }
  0xb5   : > { %444 = sbr.rel (%p2365_p1) target bundleno = 2039 (0x7f7), region = 68 }
  0xbc   : > { %1751 = dma.done.wait (%p2366_p2), [#allocation5], 256  }
  0xbd   : > { %1753 = vsyncadd (%p2366_p2), [#allocation5], 4294967040 }
  0xbe   : > { %1755 = dma.done.wait (%p2366_p2), [#allocation8], 80  }
  0xbf   : > { %1757 = vsyncadd (%p2366_p2), [#allocation8], 4294967216 }
  0xc0   : > { %1759 = dma.done.wait (%p2366_p2), [#allocation11], 32  }
  0xc1   : > { %1761 = vsyncadd (%p2366_p2), [#allocation11], 4294967264 }
  0xc2   : > { %1763 = dma.done.wait (%p2366_p2), [#allocation14], 256  }
  0xc3   : > { %1765 = vsyncadd (%p2366_p2), [#allocation14], 4294967040  ;;  %s506_s13 = sand.u32 1, %s1776_s22   ;;  %p509_p0 = scmp.lt.s32.totalorder %s1788_s25, 1 }
  0xc4   : > { %s2117_s18 = sshll.u32 %s506_s13, 3  ;;  %p511_p3 = scmp.lt.s32.totalorder %s1784_s24, 3 }
  0xc5   : > { %s510_s15 = scalar_select %p509_p0, %s1788_s25, 1 }
  0xc6   : > { %s512_s3 = scalar_select %p511_p3, %s1784_s24, 3 }
  0xc7   : > { %s1245_s28 = sshll.u32 %s510_s15, 2  ;;  %s508_s21 = scalar_lea.vmem [#allocation15], %s2117_s18 }
  0xc8   : > { %s514_s16 = sadd.s32 %s1245_s28, %s512_s3  ;;  %p1247_p8 = scmp.ne.s32.totalorder %s1784_s24, 0 }
  0xc9   : > { %s1246_s12 = sshll.u32 %s514_s16, 3  ;;  %vm522_vm0 = vcmask (!%p1247_p8), 516096   ;;  %vm524_vm1 = vcmask (!%p1247_p8), 523264   ;;  %v1810_v0 = vmov (!%p1247_p8), 0.0  }
  0xca   : > { %s516_s20 = scalar_lea.vmem %s2315_s0, %s1246_s12  ;;  %521 = sbr.rel (%p1247_p8) target bundleno = 209 (0xd1), region = 96  ;;  %523 = vst.msk [vmem:[#allocation2] sm:$0x1] (!%p1247_p8), %vm522_vm0, %v1810_v0 }
  0xcb   : > { %525 = vst.msk [vmem:[#allocation3] sm:$0xff] (!%p1247_p8), %vm524_vm1, %v1810_v0 }
  0xd1 PF: > { %v2127_v1 = vld [vmem:[%s516_s20] sm:$0xff]  ;;  %vm531_vm2 = vcmask 261120   ;;  %v1490_v4 = vld [vmem:[#allocation4] sm:$0xff]   ;;  %v1811_v5 = vmov 0.0   ;;  %vm1812_vm3 = vmmov 0   ;;  %v1491_v6 = vld [vmem:[#allocation4 + $0x8] sm:$0xff]   ;;  %v526_v8 = vlaneseq }
  0xd2   : > { %v530_v2 = vmul.f32 %v2127_v1, %v2127_v1  ;;  %1300 = vmatprep.subr.bf16.mxu1 %v1811_v5  ;;  %1304 = vmatprep.mubr.msk.bf16.mxu1 %vm1812_vm3, %v1811_v5  ;;  %v529_v11 = vld [vmem:[%s2316_s1] sm:$0x1]  ;;  %v1493_v20 = vld [vmem:[%s2320_s5 + $0x8] sm:$0xff]   ;;  %v1494_v21 = vld [vmem:[%s2320_s5 + $0x10] sm:$0xff]   ;;  %s1813_s16 = smov 64   ;;  %vm668_vm7 = vcmask 523264  }
  0xd3   : > { %1301 = vmatpush3.bf16.msra.mxu1 %v1490_v4  ;;  %1320 = vmatprep.subr.bf16.mxu0 %v1811_v5  ;;  %v2140_v10 = vshrl.u32 %v526_v8, 7  ;;  %v538_v12 = vmul.f32 5.656854, %v529_v11  ;;  %v1492_v19 = vld [vmem:[%s2320_s5] sm:$0xff]   ;;  %v1495_v22 = vld [vmem:[%s2320_s5 + $0x18] sm:$0xff]   ;;  %vm816_vm14 = vcmask 523271  }
  0xd4   : > { %v532_v3 = vsel %vm531_vm2, %v530_v2, 0.0  ;;  %1302 = vmatprep.subr.bf16.mxu1 %v1811_v5  ;;  %1328 = vmatprep.mubr.msk.bf16.mxu0 %vm1812_vm3, %v1811_v5  ;;  %v607_v27 = vld [vmem:[#allocation3] sm:$0xff]  ;;  %v606_v31 = vld [vmem:[#allocation7] sm:$0xf]  ;;  %v1251_v40 = vld [vmem:[%s2319_s4] ss:$0 sm:$0xff] }
  0xd5   : > { %533 = vadd.xlane.f32.xlu0 %v532_v3  ;;  %v2146_v13 = vsub.s32 0, %v2140_v10  ;;  %v610_v28 = vsub.s32 3, %v2140_v10  ;;  %v635_v29 = vrot.slane %v607_v27, 7  ;;  %v649_v30 = vrot.slane %v607_v27, 6  ;;  %v1252_v2 = vld [vmem:[#allocation9] ss:$0 sm:$0xff] }
  0xd6   : > { %v630_v32 = vsub.s32 2, %v2140_v10  ;;  %v644_v33 = vsub.s32 1, %v2140_v10  ;;  %vm634_vm4 = vcmp.lt.s32.totalorder %v2140_v10, 1  ;;  %vm648_vm5 = vcmp.lt.s32.totalorder %v2140_v10, 2  ;;  %s1275_s14 = sshll.u32 %s1788_s25, 2  ;;  %s1089_s30 = sshll.u32 %s508_s21, 4  ;;  %s2259_s30 = int_to_ptr.vmem [resolvable:$true] %s1089_s30 }
  0xd7   : > { %1303 = vmatpush3.bf16.msra.mxu1 %v1491_v6  ;;  %v543_v14 = vrot.slane %v538_v12, %v2146_v13  ;;  %v663_v34 = vrot.slane %v607_v27, 5  ;;  %v611_v35 = vrot.slane %v606_v31, %v610_v28  ;;  %v636_v36 = vsel %vm634_vm4, %v635_v29, 0.0  ;;  %s1085_s23 = sadd.s32 %s1784_s24, %s1275_s14  ;;  %s2368_s17 = sld [smem:[#allocation33_spill]] }
  0xd8   : > { %1308 = vmatprep.subr.bf16.mxu1 %v1811_v5  ;;  %v650_v37 = vsel %vm648_vm5, %v649_v30, 0.0  ;;  %vm662_vm6 = vcmp.lt.s32.totalorder %v2140_v10, 3  ;;  %v631_v38 = vrot.slane %v606_v31, %v630_v32  ;;  %v645_v39 = vrot.slane %v606_v31, %v644_v33  ;;  %s1276_s29 = sshll.u32 %s1085_s23, 7  ;;  %s1074_s24 = scalar_lea.sflag [#allocation6], %s506_s13 }
  0xd9   : > { %vm625_vm8 = vcmp.ge.s32.totalorder %v2140_v10, 1  ;;  %vm639_vm9 = vcmp.ge.s32.totalorder %v2140_v10, 2  ;;  %v664_v44 = vsel %vm662_vm6, %v663_v34, 0.0  ;;  %vm653_vm10 = vcmp.ge.s32.totalorder %v2140_v10, 3  ;;  %s1690_s25 = scalar_lea.vmem %s2259_s30, 128  ;;  %s1814_s3 = smov [#allocation15]  }
  0xda   : > { %v637_v42 = vmul.f32 %v636_v36, %v631_v38  ;;  %v651_v43 = vmul.f32 %v650_v37, %v645_v39  ;;  %v659_v49 = vrot.slane %v606_v31, %v2146_v13  ;;  %vm799_vm13 = vcmp.ge.s32.totalorder %v2140_v10, 4  ;;  %p1691_p10 = scmp.ne.s32.totalorder %s2259_s30, %s1690_s25  ;;  %s1694_s28 = sshll.u32 %s1814_s3, 4  ;;  %s1695_s28 = int_to_ptr.vmem [resolvable:$false] %s1694_s28 }
  0xdb   : > { %s1696_s12 = scalar_lea.vmem %s1695_s28, 256  ;;  %p1697_p6 = scmp.lt.s32.totalorder %s2259_s30, %s1695_s28 }
  0xdc   : > { %v652_v54 = vadd.f32 %v651_v43, %v637_v42  ;;  %v665_v55 = vmul.f32 %v664_v44, %v659_v49  ;;  %p1698_p7 = scmp.lt.s32.totalorder %s1696_s12, %s1690_s25 }
  0xdd   : > { %s2257_s15 = scalar_lea.hbm %s2368_s17, %s1276_s29 }
  0xde   : > { %v666_v61 = vadd.f32 %v665_v55, %v652_v54  ;;  %p1699_p9 = por %p1698_p7, %p1697_p6 }
 0x162   : > { %v534_v7 = vpop.xlane.xlu0 %533 }
 0x163   : > { %v535_v9 = vadd.f32 1e-30, %v534_v7 }
 0x165   : > { %1506 = vrsqrt.f32 %v535_v9 }
 0x16f   : > { %v1507_v15 = vpop.eup %1506 }
 0x170   : > { %v537_v16 = vmul.f32 %v1507_v15, %v2127_v1  ;;  %v1496_v15 = vld [vmem:[%s2323_s8] sm:$0xff]  }
 0x171   : > { %1321 = vmatpush3.bf16.msra.mxu0 %v1496_v15  ;;  %v1500_v15 = vld [vmem:[#allocation13] sm:$0xff]  }
 0x172   : > { %v545_v17 = vmul.f32 %v543_v14, %v537_v16  ;;  %1322 = vmatprep.subr.bf16.mxu0 %v1811_v5  ;;  %v1497_v16 = vld [vmem:[%s2323_s8 + $0x8] sm:$0xff]  }
 0x174   : > { %v546_v18 = vpack.c.bf16 %v545_v17, %v545_v17  ;;  %v1498_v17 = vld [vmem:[%s2323_s8 + $0x10] sm:$0xff]  }
 0x175   : > { %1323 = vmatpush3.bf16.msra.mxu0 %v1497_v16  ;;  %v1501_v16 = vld [vmem:[#allocation13 + $0x8] sm:$0xff]  }
 0x176   : > { %1305 = vmatmul.mubr.msk.bf16.vlgmr.msra.gmra.mrb[0].mxu1 %vm531_vm2, %v546_v18  ;;  %1324 = vmatprep.subr.bf16.mxu0 %v1811_v5  ;;  %v1499_v18 = vld [vmem:[%s2323_s8 + $0x18] sm:$0xff]  }
 0x177   : > { %1316 = vmatprep.mubr.msk.bf16.mxu1 %vm1812_vm3, %v1811_v5  ;;  %1309 = vmatpush3.bf16.msra.mxu1 %v1492_v19  ;;  %v1259_v19 = vld [vmem:[#allocation10] ss:$0 sm:$0xff] }
 0x178   : > { %1310 = vmatprep.subr.bf16.mxu1 %v1811_v5 }
 0x179   : > { %1325 = vmatpush3.bf16.msra.mxu0 %v1498_v17 }
 0x17a   : > { %1326 = vmatprep.subr.bf16.mxu0 %v1811_v5 }
 0x17b   : > { %1311 = vmatpush3.bf16.msra.mxu1 %v1493_v20 }
 0x17c   : > { %1312 = vmatprep.subr.bf16.mxu1 %v1811_v5 }
 0x17d   : > { %1327 = vmatpush3.bf16.msra.mxu0 %v1499_v18 }
 0x17e   : > { %1340 = vmatprep.subr.bf16.mxu0 %v1811_v5 }
 0x17f   : > { %1313 = vmatpush3.bf16.msra.mxu1 %v1494_v21 }
 0x180   : > { %1314 = vmatprep.subr.bf16.mxu1 %v1811_v5 }
 0x183   : > { %1315 = vmatpush3.bf16.msra.mxu1 %v1495_v22 }
 0x184   : > { %1332 = vmatprep.subr.bf16.mxu1 %v1811_v5 }
 0x249   : > { %v2168_v23 = vpop.f32.mrb[0].mxu1 }
 0x24a   : > { %613 = vrot.lane.b32.xlu0 %v2168_v23, %s1813_s16  ;;  %v1306_v24 = vpop.f32.mrb[1].mxu1  ;;  %v819_v27 = vmul.f32 0.044715, %v2168_v23 }
 0x24b   : > { %v603_v25 = vpop.f32.mrb[2].mxu1 }
 0x24c   : > { %v1307_v26 = vpop.f32.mrb[3].mxu1  ;;  %v820_v30 = vmul.f32 %v819_v27, %v2168_v23  ;;  %v1503_v27 = vld [vmem:[%s2326_s11 + $0x8] sm:$0xff]  }
 0x24e   : > { %v821_v33 = vmul.f32 %v820_v30, %v2168_v23 }
 0x2bc   : > { %v614_v41 = vpop.permute.xlu0 %613 }
 0x2bd   : > { %v616_v45 = vmul.f32 %v614_v41, %v611_v35  ;;  %v626_v46 = vrot.slane %v614_v41, 7  ;;  %v640_v47 = vrot.slane %v614_v41, 6  ;;  %v654_v48 = vrot.slane %v614_v41, 5  ;;  %669 = vst.msk [vmem:[#allocation3] sm:$0xff] %vm668_vm7, %v614_v41 }
 0x2bf   : > { %v624_v50 = vadd.f32 %v1251_v40, %v616_v45  ;;  %v627_v51 = vsel %vm625_vm8, %v626_v46, 0.0  ;;  %v641_v52 = vsel %vm639_vm9, %v640_v47, 0.0  ;;  %v655_v56 = vsel %vm653_vm10, %v654_v48, 0.0 }
 0x2c0   : > { %v632_v53 = vmul.f32 %v631_v38, %v627_v51  ;;  %v646_v58 = vmul.f32 %v645_v39, %v641_v52  ;;  %v660_v60 = vmul.f32 %v659_v49, %v655_v56  ;;  %v822_v39 = vadd.f32 %v821_v33, %v2168_v23 }
 0x2c2   : > { %v633_v57 = vadd.f32 %v632_v53, %v624_v50  ;;  %v823_v43 = vmul.f32 0.7978846, %v822_v39 }
 0x2c4   : > { %v647_v59 = vadd.f32 %v646_v58, %v633_v57 }
 0x2c6   : > { %v661_v62 = vadd.f32 %v660_v60, %v647_v59  ;;  %v1260_v60 = vld [vmem:[#allocation2] ss:$0 sm:$0xff] }
 0x2c8   : > { %v667_v63 = vadd.f32 %v666_v61, %v661_v62 }
 0x2ca   : > { %v670_v0 = vpack.c.bf16 %v667_v63, %v667_v63 }
 0x2cc   : > { %1317 = vmatmul.mubr.msk.bf16.vlgmr.msra.gmra.mrb[4].mxu1 %vm668_vm7, %v670_v0 }
 0x2cd   : > { %1336 = vmatprep.mubr.msk.bf16.mxu1 %vm1812_vm3, %v1811_v5  ;;  %1333 = vmatpush3.bf16.msra.mxu1 %v1500_v15 }
 0x2ce   : > { %1334 = vmatprep.subr.bf16.mxu1 %v1811_v5 }
 0x2d1   : > { %1335 = vmatpush3.bf16.msra.mxu1 %v1501_v16 }
 0x39f   : > { %v747_v3 = vpop.f32.mrb[4].mxu1 }
 0x3a0   : > { %v748_v4 = vadd.f32 %v1252_v2, %v747_v3  ;;  %v1318_v6 = vpop.f32.mrb[5].mxu1 }
 0x3a1   : > { %v750_v7 = vpop.f32.mrb[6].mxu1 }
 0x3a2   : > { %v1258_v8 = vmul.f32 -1.442695, %v748_v4  ;;  %v1319_v9 = vpop.f32.mrb[7].mxu1 }
 0x3a4   : > { %1508 = vpow2.f32 %v1258_v8 }
 0x3ae   : > { %v1509_v11 = vpop.eup %1508 }
 0x3af   : > { %v757_v12 = vadd.f32 1.0, %v1509_v11 }
 0x3b1   : > { %1510 = vrcp.f32 %v757_v12 }
 0x3bb   : > { %v1511_v14 = vpop.eup %1510 }
 0x3bc   : > { %780 = vrot.lane.b32.xlu1 %v1511_v14, %s1813_s16  ;;  %v766_v20 = vmul.f32 %v1511_v14, %v1259_v19  ;;  %v905_v19 = vld [vmem:[#allocation12] sm:$0x1] }
 0x3be   : > { %v767_v21 = vmul.f32 1.442695, %v766_v20  ;;  %v913_v20 = vmul.f32 5.656854, %v905_v19 }
 0x3c0   : > { %1512 = vpow2.f32 %v767_v21 }
 0x3ca   : > { %v1513_v22 = vpop.eup %1512 }
 0x3cb   : > { %v769_v24 = vmul.f32 %v1513_v22, %v1513_v22  ;;  %v789_v29 = vrot.slane %v1513_v22, 7 }
 0x3cd   : > { %v770_v25 = vsub.f32 1.0, %v769_v24  ;;  %v790_v32 = vmul.f32 %v1513_v22, %v789_v29 }
 0x3cf   : > { %v771_v26 = vadd.f32 1e-06, %v770_v25  ;;  %v791_v36 = vsel %vm625_vm8, %v790_v32, %v1513_v22 }
 0x3d0   : > { %v796_v41 = vrot.slane %v791_v36, 6 }
 0x3d1   : > { %1514 = vrsqrt.f32 %v771_v26  ;;  %vm774_vm11 = vcmp.eq.f32.partialorder %v771_v26, inf  ;;  %v777_v35 = vand.u32 2147483648, %v771_v26  ;;  %vm776_vm12 = vcmp.eq.f32.partialorder %v771_v26, 0.0 }
 0x3d2   : > { %v797_v45 = vmul.f32 %v796_v41, %v791_v36  ;;  %1516 = vtanh.f32 %v823_v43 }
 0x3d4   : > { %v798_v48 = vsel %vm639_vm9, %v797_v45, %v791_v36 }
 0x3d5   : > { %v804_v51 = vrot.slane %v798_v48, 4 }
 0x3d7   : > { %v805_v54 = vmul.f32 %v804_v51, %v798_v48 }
 0x3d9   : > { %v806_v59 = vsel %vm799_vm13, %v805_v54, %v798_v48 }
 0x3da   : > { %v814_v0 = vmul.f32 %v1260_v60, %v806_v59 }
 0x3db   : > { %v1515_v28 = vpop.eup %1514 }
 0x3dc   : > { %v773_v31 = vmul.f32 %v1515_v28, %v771_v26  ;;  %v1517_v56 = vpop.eup %1516  ;;  %v1505_v28 = vld [vmem:[%s2326_s11 + $0x18] sm:$0xff]  }
 0x3dd   : > { %v825_v61 = vadd.f32 1.0, %v1517_v56 }
 0x3de   : > { %v775_v34 = vsel %vm774_vm11, %v771_v26, %v773_v31  ;;  %v1502_v26 = vld [vmem:[%s2326_s11] sm:$0xff]  }
 0x3df   : > { %v778_v38 = vsel %vm776_vm12, %v777_v35, %v775_v34 }
 0x42e   : > { %v781_v37 = vpop.permute.xlu1 %780 }
 0x42f   : > { %v783_v40 = vmul.f32 %v781_v37, %v778_v38 }
 0x431   : > { %v784_v42 = vmul.f32 %v783_v40, %v667_v63  ;;  %v818_v63 = vmul.f32 0.5, %v2168_v23 }
 0x433   : > { %v785_v44 = vrot.slane %v784_v42, 7  ;;  %v826_v4 = vmul.f32 %v825_v61, %v818_v63 }
 0x435   : > { %v786_v46 = vmul.f32 %v1513_v22, %v785_v44 }
 0x437   : > { %v787_v47 = vadd.f32 %v786_v46, %v784_v42 }
 0x439   : > { %v788_v49 = vsel %vm625_vm8, %v787_v47, %v784_v42 }
 0x43a   : > { %v792_v50 = vrot.slane %v788_v49, 6 }
 0x43c   : > { %v793_v52 = vmul.f32 %v792_v50, %v791_v36 }
 0x43e   : > { %v794_v53 = vadd.f32 %v793_v52, %v788_v49 }
 0x440   : > { %v795_v55 = vsel %vm639_vm9, %v794_v53, %v788_v49 }
 0x441   : > { %v800_v57 = vrot.slane %v795_v55, 4 }
 0x443   : > { %v801_v58 = vmul.f32 %v800_v57, %v798_v48 }
 0x445   : > { %v802_v62 = vadd.f32 %v801_v58, %v795_v55 }
 0x447   : > { %v803_v2 = vsel %vm799_vm13, %v802_v62, %v795_v55 }
 0x448   : > { %v815_v3 = vadd.f32 %v814_v0, %v803_v2 }
 0x44a   : > { %817 = vst.msk [vmem:[#allocation2 - $0x7] sm:$0x80] %vm816_vm14, %v815_v3  ;;  %v827_v6 = vmul.f32 %v826_v4, %v815_v3 }
 0x44c   : > { %v828_v7 = vpack.c.bf16 %v827_v6, %v827_v6 }
 0x44e   : > { %1329 = vmatmul.mubr.msk.bf16.vlgmr.msra.gmra.mrb[0].mxu0 %vm668_vm7, %v828_v7 }
 0x44f   : > { %1348 = vmatprep.mubr.msk.bf16.mxu0 %vm1812_vm3, %v1811_v5  ;;  %1341 = vmatpush3.bf16.msra.mxu0 %v1502_v26 }
 0x450   : > { %1342 = vmatprep.subr.bf16.mxu0 %v1811_v5 }
 0x453   : > { %1343 = vmatpush3.bf16.msra.mxu0 %v1503_v27 }
 0x454   : > { %1344 = vmatprep.subr.bf16.mxu0 %v1811_v5 }
 0x521   : > { %v898_v10 = vpop.f32.mrb[0].mxu0 }
 0x522   : > { %v904_v8 = vadd.f32 %v898_v10, %v2127_v1  ;;  %v1330_v9 = vpop.f32.mrb[1].mxu0  ;;  %v918_v1 = vrot.slane %v913_v20, %v2146_v13  ;;  %v1504_v13 = vld [vmem:[%s2326_s11 + $0x10] sm:$0xff]  }
 0x523   : > { %v901_v11 = vpop.f32.mrb[2].mxu0  ;;  %1345 = vmatpush3.bf16.msra.mxu0 %v1504_v13 }
 0x524   : > { %v1331_v12 = vpop.f32.mrb[3].mxu0  ;;  %v906_v23 = vmul.f32 %v904_v8, %v904_v8  ;;  %1346 = vmatprep.subr.bf16.mxu0 %v1811_v5 }
 0x526   : > { %v907_v14 = vsel %vm531_vm2, %v906_v23, 0.0 }
 0x527   : > { %908 = vadd.xlane.f32.xlu1 %v907_v14  ;;  %1347 = vmatpush3.bf16.msra.mxu0 %v1505_v28 }
 0x5b4   : > { %v909_v17 = vpop.xlane.xlu1 %908 }
 0x5b5   : > { %v910_v18 = vadd.f32 1e-30, %v909_v17 }
 0x5b7   : > { %1518 = vrsqrt.f32 %v910_v18 }
 0x5c1   : > { %v1519_v21 = vpop.eup %1518 }
 0x5c2   : > { %v912_v22 = vmul.f32 %v1519_v21, %v904_v8 }
 0x5c4   : > { %v920_v24 = vmul.f32 %v918_v1, %v912_v22 }
 0x5c6   : > { %v921_v25 = vpack.c.bf16 %v920_v24, %v920_v24 }
 0x5c8   : > { %1337 = vmatmul.mubr.msk.bf16.vlgmr.msra.gmra.mrb[8].mxu1 %vm531_vm2, %v921_v25 }
 0x69b   : > { %v975_v29 = vpop.f32.mrb[8].mxu1 }
 0x69c   : > { %991 = vrot.lane.b32.xlu0 %v975_v29, %s1813_s16  ;;  %v1338_v30 = vpop.f32.mrb[9].mxu1  ;;  %v982_v33 = vmul.f32 0.044715, %v975_v29  ;;  %v981_v39 = vmul.f32 0.5, %v975_v29  ;;  %s2367_s16 = sld [smem:[#allocation27_spill]] }
 0x69d   : > { %v978_v31 = vpop.f32.mrb[10].mxu1 }
 0x69e   : > { %v1339_v32 = vpop.f32.mrb[11].mxu1  ;;  %v983_v34 = vmul.f32 %v982_v33, %v975_v29 }
 0x6a0   : > { %v984_v35 = vmul.f32 %v983_v34, %v975_v29 }
 0x6a2   : > { %v985_v36 = vadd.f32 %v984_v35, %v975_v29  ;;  %p2369_p12 = scmp.ne.s32.totalorder %s2367_s16, 0 }
 0x6a4   : > { %v986_v37 = vmul.f32 0.7978846, %v985_v36  ;;  %p1692_p4 = pnand %p1691_p10, %p2369_p12 }
 0x6a6   : > { %1520 = vtanh.f32 %v986_v37  ;;  %p1693_p5 = pneg %p1692_p4 }
 0x6a8   : > { %p1700_p11 = pnand %p1699_p9, %p1693_p5 }
 0x6b0   : > { %v1521_v5 = vpop.eup %1520 }
 0x6b1   : > { %v988_v38 = vadd.f32 1.0, %v1521_v5 }
 0x6b3   : > { %v989_v40 = vmul.f32 %v988_v38, %v981_v39 }
 0x70e   : > { %v992_v41 = vpop.permute.xlu0 %991 }
 0x70f   : > { %v994_v42 = vmul.f32 %v992_v41, %v989_v40 }
 0x711   : > { %v995_v43 = vpack.c.bf16 %v994_v42, %v994_v42 }
 0x713   : > { %1349 = vmatmul.mubr.msk.bf16.vlgmr.msra.gmra.mrb[4].mxu0 %vm668_vm7, %v995_v43 }
 0x7e6   : > { %v1065_v44 = vpop.f32.mrb[4].mxu0 }
 0x7e7   : > { %v1071_v45 = vadd.f32 %v1065_v44, %v904_v8  ;;  %v1350_v46 = vpop.f32.mrb[5].mxu0 }
 0x7e8   : > { %v1068_v47 = vpop.f32.mrb[6].mxu0 }
 0x7e9   : > { %1072 = vst.msk [vmem:[%s508_s21] sm:$0xff] %vm531_vm2, %v1071_v45  ;;  %v1351_v48 = vpop.f32.mrb[7].mxu0 }
 0x7ea   : > { %1703 = shalt.err (!%p1700_p11)
}
 0x7eb   : > { %s1704_s13 = scalar_lea.hbm %s2257_s15, 128  ;;  %s1708_s26 = scalar_lea.hbm %s2368_s17, 1024 }
 0x7ec   : > { %p1705_p13 = scmp.ne.s32.totalorder %s2257_s15, %s1704_s13  ;;  %p1709_p0 = scmp.lt.u32.totalorder %s2257_s15, %s2368_s17 }
 0x7ed   : > { %p1710_p3 = scmp.lt.u32.totalorder %s1708_s26, %s1704_s13  ;;  %p1712_p10 = scmp.lt.u32.totalorder %s1704_s13, %s2257_s15 }
 0x7ee   : > { %p1706_p1 = pnand %p1705_p13, %p2369_p12 }
 0x7ef   : > { %p1711_p8 = por %p1710_p3, %p1709_p0 }
 0x7f0   : > { %p1707_p2 = pneg %p1706_p1 }
 0x7f1   : > { %p1713_p4 = por %p1712_p10, %p1711_p8 }
 0x7f3   : > { %p1714_p5 = pnand %p1713_p4, %p1707_p2 }
 0x7f5   : > { %1717 = shalt.err (!%p1714_p5)
}
 0x7f6   : > { %1376 = dma.vmem_to_hbm [thread:$0]  (%p2369_p12), %s2259_s30, 128, %s2257_s15, %s1074_s24  }
 0x7f7 PF: > { %s2370_s14 = sld [smem:[#allocation25_spill]]  ;;  %s2371_s23 = sld [smem:[#allocation21_spill]] }
 0x7f8   : > { %s2372_s29 = sld [smem:[#allocation29_spill]] }
 0x7fd   : > { %p1413_p6 = scmp.ge.s32.totalorder %s2370_s14, 2  ;;  %s1101_s27 = sand.u32 1, %s2371_s23  }
 0x7fe   : > { %p2373_p7 = scmp.ne.s32.totalorder %s2372_s29, 0  ;;  %s1102_s7 = scalar_lea.sflag [#allocation6], %s1101_s27 }
 0x800   : > { %p1398_p9 = pnand %p1413_p6, %p2373_p7 }
 0x802   : > { %1767 = dma.done.wait (!%p1398_p9), %s1102_s7, 128  }
 0x803   : > { %1769 = vsyncadd (!%p1398_p9), %s1102_s7, 4294967168  ;;  %s29_s28 = sadd.s32 1, %s2370_s14   ;;  %s2374_s25 = sld [smem:[#allocation22_spill]] }
 0x804   : > { %p26_p11 = scmp.ge.s32.totalorder %s29_s28, 10   ;;  %s2375_s23 = sld [smem:[#allocation30_spill]] }
 0x805   : > { %s2376_s24 = sld [smem:[#allocation23_spill]]  ;;  %s2377_s16 = sld [smem:[#allocation24_spill]] }
 0x806   : > { %s2378_s26 = sld [smem:[#allocation26_spill]]  ;;  %s2379_s27 = sld [smem:[#allocation28_spill]] }
 0x807   : > { %s2380_s21 = smov %s1776_s22  ;;  %28 = sbr.rel (!%p26_p11) target bundleno = 13 (0xd), region = 132 }
 0x809   : > { %s2381_s22 = smov %s2374_s25 }
 0x80b   : > { %s2382_s25 = smov %s2377_s16 }
 0x80e   :  { %1107 = vsyncpa [#allocation5], 1 }
 0x80f   :  { %1109 = vsyncpa [#allocation5 + $0x1], 1 }
 0x810   :  { %1110 = vsyncpa [#allocation8], 1 }
 0x811   :  { %1111 = vsyncpa [#allocation11], 1 }
 0x812   :  { %1112 = vsyncpa [#allocation14], 1 }
 0x813   :  { %1113 = vsyncpa [#allocation6], 1 }
 0x814   :  { %1115 = vsyncpa [#allocation6 + $0x1], 1 }

// kernel: tpu_custom_call.1
= control target key start
LH: loop header
LB: loop body
LE: loop exit
PB: predicated region body
PF: predicated region fallthrough
CT: control target
= control target key end

     0   :  { %s2315_s0 = inlined_call_operand.vmem [shape: f32[2,32,32], index: 0, kind: input, shape index: {}]   ;;  %s2316_s1 = inlined_call_operand.vmem [shape: f32[1,32], index: 1, kind: input, shape index: {}]   ;;  %s2317_s2 = inlined_call_operand.hbm [shape: bf16[32,128], index: 2, kind: input, shape index: {}]   ;;  %s2318_s3 = inlined_call_operand.hbm [shape: f32[4,64], index: 3, kind: input, shape index: {}]   ;;  %s2319_s4 = inlined_call_operand.vmem [shape: f32[1,64], index: 4, kind: input, shape index: {}]   ;;  %s2320_s5 = inlined_call_operand.vmem [shape: bf16[64,128], index: 5, kind: input, shape index: {}]   ;;  %s2321_s6 = inlined_call_operand.hbm [shape: f32[1,128], index: 6, kind: input, shape index: {}]   ;;  %s2322_s7 = inlined_call_operand.hbm [shape: f32[1,64], index: 7, kind: input, shape index: {}]   ;;  %s2323_s8 = inlined_call_operand.vmem [shape: bf16[64,32], index: 8, kind: input, shape index: {}]   ;;  %s2324_s9 = inlined_call_operand.hbm [shape: f32[1,32], index: 9, kind: input, shape index: {}]   ;;  %s2325_s10 = inlined_call_operand.hbm [shape: bf16[32,128], index: 10, kind: input, shape index: {}]   ;;  %s2326_s11 = inlined_call_operand.vmem [shape: bf16[64,32], index: 11, kind: input, shape index: {}]   ;;  %s2327_s12 = inlined_call_operand.hbm [shape: f32[2,32,32], index: 12, kind: output, shape index: {}]  }
   0x1   :  { %2344 = sst [smem:[#allocation31_spill]] %s2318_s3 }
   0x2   :  { %2345 = sst [smem:[#allocation32_spill]] %s2322_s7 }
   0x3   :  { %2346 = sst [smem:[#allocation33_spill]] %s2327_s12 }
   0x4   :  { %17 = vsyncpa [#allocation5], 0 }
   0x5   :  { %18 = vsyncpa [#allocation8], 0 }
   0x6   :  { %19 = vsyncpa [#allocation11], 0 }
   0x7   :  { %20 = vsyncpa [#allocation14], 0 }
   0x8   :  { %21 = vsyncpa [#allocation6], 0 }
   0x9   :  { %23 = vsyncpa [#allocation6 + $0x1], 0  ;;  %s1880_s21 = smov 0   ;;  %s1882_s22 = smov 0  }
   0xa   :  { %s1884_s23 = smov 0   ;;  %s1886_s24 = smov 0  }
   0xb   :  { %s1888_s25 = smov 0   ;;  %s1890_s26 = smov 0  }
   0xc   :  { %s1892_s27 = smov 0   ;;  %s1894_s28 = smov 0  }
   0xd LB: > { %2347 = sst [smem:[#allocation21_spill]] %s1772_s21  ;;  %s1227_s29 = sadd.s32 4294967295, %s1800_s28   ;;  %s1800_s28 = sphi %s1894_s28, %s29_s28   ;;  %s1796_s27 = sphi %s1892_s27, %s2379_s27   ;;  %s1792_s26 = sphi %s1890_s26, %s2378_s26   ;;  %s1788_s25 = sphi %s1888_s25, %s2382_s25   ;;  %s1784_s24 = sphi %s1886_s24, %s2376_s24   ;;  %s1780_s23 = sphi %s1884_s23, %s2375_s23   ;;  %s1776_s22 = sphi %s1882_s22, %s2381_s22   ;;  %s1772_s21 = sphi %s1880_s21, %s2380_s21  }
   0xe   : > { %2348 = sst [smem:[#allocation22_spill]] %s1780_s23  ;;  %s1228_s30 = sadd.s32 4294967294, %s1800_s28  }
   0xf   : > { %2349 = sst [smem:[#allocation23_spill]] %s1792_s26  ;;  %s38_s13 = sadd.s32 1, %s1792_s26 }
  0x10   : > { %2350 = sst [smem:[#allocation24_spill]] %s1796_s27  ;;  %s41_s14 = sadd.s32 1, %s1796_s27 }
  0x11   : > { %2351 = sst [smem:[#allocation25_spill]] %s1800_s28  ;;  %p39_p0 = scmp.ge.s32.totalorder %s38_s13, 4 }
  0x12   : > { %s309_s15 = sadd.s32 1, %s1780_s23  ;;  %p319_p1 = scmp.ne.s32.totalorder %s1780_s23, %s1776_s22 }
  0x13   : > { %p320_p2 = scmp.eq.s32.totalorder %s1227_s29, 7  ;;  %s2384_s13 = smov (%p39_p0, %s38_s13), 0 }
  0x14   : > { %2352 = sst [smem:[#allocation26_spill]] %s2384_s13  ;;  %s2386_s14 = smov (!%p39_p0, %s41_s14), %s1796_s27 }
  0x15   : > { %s305_s16 = ssub.s32 %s1792_s26, %s2384_s13  ;;  %p1932_p3 = por %p320_p2, %p319_p1 }
  0x16   : > { %p43_p4 = scmp.ge.s32.totalorder %s2386_s14, 2  ;;  %p325_p5 = scmp.ne.s32.totalorder %s1776_s22, %s1772_s21 }
  0x17   : > { %s2353_s17 = scalar_select %p1932_p3, 1, 0 }
  0x18   : > { %p326_p6 = scmp.eq.s32.totalorder %s1228_s30, 7  ;;  %p1229_p7 = scmp.ge.s32.totalorder %s1800_s28, 1 }
  0x19   : > { %2354 = sst [smem:[#allocation27_spill]] %s2353_s17  ;;  %s2388_s14 = smov (%p43_p4, %s2386_s14), 0 }
  0x1a   : > { %2355 = sst [smem:[#allocation28_spill]] %s2388_s14  ;;  %p1941_p8 = por %p326_p6, %p325_p5 }
  0x1b   : > { %p333_p9 = scmp.lt.s32.totalorder %s1800_s28, 9  ;;  %s304_s19 = ssub.s32 %s1796_s27, %s2388_s14 }
  0x1c   : > { %s2356_s18 = scalar_select %p1941_p8, 1, 0 }
  0x1d   : > { %s306_s20 = sor.u32 %s305_s16, %s304_s19  ;;  %p1948_p10 = pnand %p1229_p7, %p333_p9 }
  0x1e   : > { %2357 = sst [smem:[#allocation29_spill]] %s2356_s18  ;;  %p307_p11 = scmp.eq.s32.totalorder %s306_s20, 0 }
  0x1f   : > { %s2358_s13 = scalar_select %p1948_p10, 1, 0 }
  0x20   : > { %p1952_p12 = scmp.eq.s32.totalorder %s1227_s29, 0  ;;  %p1378_p13 = pneg %p1948_p10 }
  0x21   : > { %s1959_s30 = scalar_select %p307_p11, %s1780_s23, %s309_s15  }
  0x22   : > { %s2359_s26 = scalar_select %p1952_p12, 1, 0 }
  0x23   : > { %2360 = sst [smem:[#allocation30_spill]] %s1959_s30  ;;  %p1963_p0 = pnand %p1952_p12, %p1378_p13 }
  0x24   : > { %s1802_s16 = smov [#allocation7]   ;;  %s1803_s14 = smov [#allocation10]  }
  0x25   : > { %s362_s19 = sshll.u32 %s1802_s16, 4  ;;  %s390_s20 = sshll.u32 %s1803_s14, 4  ;;  %s363_s19 = int_to_ptr.vmem [resolvable:$true] %s362_s19  ;;  %s391_s20 = int_to_ptr.vmem [resolvable:$true] %s390_s20 }
  0x26   : > { %s2362_s3 = sld [smem:[#allocation31_spill]]  ;;  %p1975_p2 = pneg %p1963_p0 }
  0x2c   : > { %s1522_s21 = scalar_lea.hbm %s2362_s3, 64 }
  0x2d   : > { %p1523_p1 = scmp.ne.s32.totalorder %s2362_s3, %s1522_s21  ;;  %p1529_p6 = scmp.lt.u32.totalorder %s1522_s21, %s2362_s3 }
  0x2f   : > { %p1525_p4 = pnand %p1975_p2, %p1523_p1 }
  0x31   : > { %p1526_p5 = pneg %p1525_p4 }
  0x33   : > { %p1531_p7 = pnand %p1529_p6, %p1526_p5 }
  0x35   : > { %1534 = shalt.err (!%p1531_p7)
}
  0x36   : > { %s1535_s27 = scalar_lea.vmem %s363_s19, 64  ;;  %p1543_p8 = scmp.lt.s32.totalorder %s363_s19, %s363_s19 }
  0x37   : > { %p1536_p9 = scmp.ne.s32.totalorder %s363_s19, %s1535_s27  ;;  %p1544_p3 = scmp.lt.s32.totalorder %s1535_s27, %s1535_s27 }
  0x39   : > { %p1538_p11 = pnand %p1536_p9, %p1975_p2  ;;  %p1545_p12 = por %p1544_p3, %p1543_p8 }
  0x3b   : > { %p1539_p13 = pneg %p1538_p11 }
  0x3d   : > { %p1546_p10 = pnand %p1545_p12, %p1539_p13 }
  0x3f   : > { %1549 = shalt.err (!%p1546_p10)
}
  0x40   : > { %1384 = dma.hbm_to_vmem [thread:$0]  (!%p1963_p0), %s2362_s3, 64, %s363_s19, [#allocation8]  }
  0x41   : > { %s2364_s7 = sld [smem:[#allocation32_spill]] }
  0x47   : > { %s1550_s30 = scalar_lea.hbm %s2364_s7, 16 }
  0x48   : > { %p1551_p1 = scmp.ne.s32.totalorder %s2364_s7, %s1550_s30  ;;  %p1557_p10 = scmp.lt.u32.totalorder %s1550_s30, %s2364_s7 }
  0x4a   : > { %p1553_p3 = pnand %p1551_p1, %p1975_p2 }
  0x4c   : > { %p1554_p8 = pneg %p1553_p3 }
  0x4e   : > { %p1559_p12 = pnand %p1557_p10, %p1554_p8 }
  0x50   : > { %1562 = shalt.err (!%p1559_p12)
}
  0x51   : > { %s1563_s12 = scalar_lea.vmem %s391_s20, 16  ;;  %s1570_s19 = scalar_lea.vmem %s391_s20, 32 }
  0x52   : > { %p1564_p4 = scmp.ne.s32.totalorder %s391_s20, %s1563_s12  ;;  %p1571_p7 = scmp.lt.s32.totalorder %s391_s20, %s391_s20 }
  0x53   : > { %p1572_p9 = scmp.lt.s32.totalorder %s1570_s19, %s1563_s12 }
  0x54   : > { %p1566_p5 = pnand %p1564_p4, %p1975_p2 }
  0x55   : > { %p1573_p11 = por %p1572_p9, %p1571_p7 }
  0x56   : > { %p1567_p6 = pneg %p1566_p5 }
  0x58   : > { %p1574_p13 = pnand %p1573_p11, %p1567_p6 }
  0x5a   : > { %1577 = shalt.err (!%p1574_p13)
}
  0x5b   : > { %1390 = dma.hbm_to_vmem [thread:$0]  (!%p1963_p0), %s2364_s7, 16, %s391_s20, [#allocation11]  }
  0x5c   : > { %s1804_s23 = smov [#allocation4]   ;;  %s1578_s16 = scalar_lea.hbm %s2317_s2, 256 }
  0x5d   : > { %s348_s14 = sshll.u32 %s1804_s23, 4  ;;  %p1579_p1 = scmp.ne.s32.totalorder %s2317_s2, %s1578_s16  ;;  %s349_s14 = int_to_ptr.vmem [resolvable:$true] %s348_s14 }
  0x5e   : > { %p1585_p10 = scmp.lt.u32.totalorder %s1578_s16, %s2317_s2 }
  0x5f   : > { %p1581_p3 = pnand %p1579_p1, %p1975_p2 }
  0x61   : > { %p1582_p8 = pneg %p1581_p3 }
  0x63   : > { %p1587_p12 = pnand %p1585_p10, %p1582_p8 }
  0x65   : > { %1590 = shalt.err (!%p1587_p12)
}
  0x66   : > { %s1591_s20 = scalar_lea.vmem %s349_s14, 256  ;;  %p1599_p7 = scmp.lt.s32.totalorder %s349_s14, %s349_s14 }
  0x67   : > { %p1592_p4 = scmp.ne.s32.totalorder %s349_s14, %s1591_s20  ;;  %p1600_p9 = scmp.lt.s32.totalorder %s1591_s20, %s1591_s20 }
  0x69   : > { %p1594_p5 = pnand %p1592_p4, %p1975_p2  ;;  %p1601_p11 = por %p1600_p9, %p1599_p7 }
  0x6b   : > { %p1595_p6 = pneg %p1594_p5 }
  0x6d   : > { %p1602_p13 = pnand %p1601_p11, %p1595_p6 }
  0x6f   : > { %1605 = shalt.err (!%p1602_p13)
}
  0x70   : > { %s1805_s3 = smov 64   ;;  %s1806_s28 = smov 4  }
  0x71   : > { %1381 = dma.hbm_to_vmem [thread:$0]  (!%p1963_p0), %s2317_s2, 256, %s349_s14, [#allocation5], %s1805_s3, %s1805_s3, %s1806_s28  }
  0x72   : > { %s1807_s30 = smov [#allocation9]   ;;  %s1808_s16 = smov [#allocation12]  }
  0x73   : > { %s379_s29 = sshll.u32 %s1807_s30, 4  ;;  %s404_s27 = sshll.u32 %s1808_s16, 4  ;;  %s380_s29 = int_to_ptr.vmem [resolvable:$true] %s379_s29  ;;  %s2030_s27 = int_to_ptr.vmem [resolvable:$true] %s404_s27 }
  0x74   : > { %s1606_s20 = scalar_lea.hbm %s2321_s6, 16 }
  0x75   : > { %p1607_p1 = scmp.ne.s32.totalorder %s2321_s6, %s1606_s20  ;;  %p1613_p10 = scmp.lt.u32.totalorder %s1606_s20, %s2321_s6 }
  0x77   : > { %p1609_p3 = pnand %p1607_p1, %p1975_p2 }
  0x79   : > { %p1610_p8 = pneg %p1609_p3 }
  0x7b   : > { %p1615_p12 = pnand %p1613_p10, %p1610_p8 }
  0x7d   : > { %1618 = shalt.err (!%p1615_p12)
}
  0x7e   : > { %s1619_s23 = scalar_lea.vmem %s380_s29, 16  ;;  %s1626_s30 = scalar_lea.vmem %s380_s29, 32 }
  0x7f   : > { %p1620_p4 = scmp.ne.s32.totalorder %s380_s29, %s1619_s23  ;;  %p1627_p7 = scmp.lt.s32.totalorder %s380_s29, %s380_s29 }
  0x80   : > { %p1628_p9 = scmp.lt.s32.totalorder %s1626_s30, %s1619_s23 }
  0x81   : > { %p1622_p5 = pnand %p1620_p4, %p1975_p2 }
  0x82   : > { %p1629_p11 = por %p1628_p9, %p1627_p7 }
  0x83   : > { %p1623_p6 = pneg %p1622_p5 }
  0x85   : > { %p1630_p13 = pnand %p1629_p11, %p1623_p6 }
  0x87   : > { %1633 = shalt.err (!%p1630_p13)
}
  0x88   : > { %1387 = dma.hbm_to_vmem [thread:$0]  (!%p1963_p0), %s2321_s6, 16, %s380_s29, [#allocation8]  }
  0x89   : > { %s1634_s19 = scalar_lea.hbm %s2324_s9, 16 }
  0x8a   : > { %p1635_p1 = scmp.ne.s32.totalorder %s2324_s9, %s1634_s19  ;;  %p1641_p10 = scmp.lt.u32.totalorder %s1634_s19, %s2324_s9 }
  0x8c   : > { %p1637_p3 = pnand %p1635_p1, %p1975_p2 }
  0x8e   : > { %p1638_p8 = pneg %p1637_p3 }
  0x90   : > { %p1643_p12 = pnand %p1641_p10, %p1638_p8 }
  0x92   : > { %1646 = shalt.err (!%p1643_p12)
}
  0x93   : > { %s1647_s29 = scalar_lea.vmem %s2030_s27, 16  ;;  %s1654_s30 = scalar_lea.vmem %s2030_s27, 32 }
  0x94   : > { %p1648_p4 = scmp.ne.s32.totalorder %s2030_s27, %s1647_s29  ;;  %p1655_p7 = scmp.lt.s32.totalorder %s2030_s27, %s2030_s27 }
  0x95   : > { %p1656_p9 = scmp.lt.s32.totalorder %s1654_s30, %s1647_s29 }
  0x96   : > { %p1650_p5 = pnand %p1648_p4, %p1975_p2 }
  0x97   : > { %p1657_p11 = por %p1656_p9, %p1655_p7 }
  0x98   : > { %p1651_p6 = pneg %p1650_p5 }
  0x9a   : > { %p1658_p13 = pnand %p1657_p11, %p1651_p6 }
  0x9c   : > { %1661 = shalt.err (!%p1658_p13)
}
  0x9d   : > { %1393 = dma.hbm_to_vmem [thread:$0]  (!%p1963_p0), %s2324_s9, 16, %s2030_s27, [#allocation11]  }
  0x9e   : > { %s1809_s16 = smov [#allocation13]   ;;  %s1662_s21 = scalar_lea.hbm %s2325_s10, 256 }
  0x9f   : > { %s414_s12 = sshll.u32 %s1809_s16, 4  ;;  %p1663_p1 = scmp.ne.s32.totalorder %s2325_s10, %s1662_s21  ;;  %s415_s12 = int_to_ptr.vmem [resolvable:$true] %s414_s12 }
  0xa0   : > { %p1669_p10 = scmp.lt.u32.totalorder %s1662_s21, %s2325_s10 }
  0xa1   : > { %p1665_p3 = pnand %p1663_p1, %p1975_p2 }
  0xa3   : > { %p1666_p8 = pneg %p1665_p3 }
  0xa5   : > { %p1671_p12 = pnand %p1669_p10, %p1666_p8 }
  0xa7   : > { %1674 = shalt.err (!%p1671_p12)
}
  0xa8   : > { %s1675_s27 = scalar_lea.vmem %s415_s12, 256  ;;  %p1683_p7 = scmp.lt.s32.totalorder %s415_s12, %s415_s12 }
  0xa9   : > { %p1676_p4 = scmp.ne.s32.totalorder %s415_s12, %s1675_s27  ;;  %p1684_p9 = scmp.lt.s32.totalorder %s1675_s27, %s1675_s27 }
  0xab   : > { %p1678_p5 = pnand %p1676_p4, %p1975_p2  ;;  %p1685_p11 = por %p1684_p9, %p1683_p7 }
  0xad   : > { %p1679_p6 = pneg %p1678_p5 }
  0xaf   : > { %p1686_p13 = pnand %p1685_p11, %p1679_p6 }
  0xb1   : > { %1689 = shalt.err (!%p1686_p13)
}
  0xb2   : > { %1396 = dma.hbm_to_vmem [thread:$0]  (!%p1963_p0), %s2325_s10, 256, %s415_s12, [#allocation14], %s1805_s3, %s1805_s3, %s1806_s28  }
  0xb3   : > { %p2365_p1 = scmp.ne.s32.totalorder %s2358_s13, 0 }
  0xb4   : > { %p2366_p2 = scmp.ne.s32.totalorder (!%p2365_p1), %s2359_s26, 0 }
  0xb5   : > { %444 = sbr.rel (%p2365_p1) target bundleno = 2039 (0x7f7), region = 68 }
  0xbc   : > { %1751 = dma.done.wait (%p2366_p2), [#allocation5], 256  }
  0xbd   : > { %1753 = vsyncadd (%p2366_p2), [#allocation5], 4294967040 }
  0xbe   : > { %1755 = dma.done.wait (%p2366_p2), [#allocation8], 80  }
  0xbf   : > { %1757 = vsyncadd (%p2366_p2), [#allocation8], 4294967216 }
  0xc0   : > { %1759 = dma.done.wait (%p2366_p2), [#allocation11], 32  }
  0xc1   : > { %1761 = vsyncadd (%p2366_p2), [#allocation11], 4294967264 }
  0xc2   : > { %1763 = dma.done.wait (%p2366_p2), [#allocation14], 256  }
  0xc3   : > { %1765 = vsyncadd (%p2366_p2), [#allocation14], 4294967040  ;;  %s506_s13 = sand.u32 1, %s1776_s22   ;;  %p509_p0 = scmp.lt.s32.totalorder %s1788_s25, 1 }
  0xc4   : > { %s2117_s18 = sshll.u32 %s506_s13, 3  ;;  %p511_p3 = scmp.lt.s32.totalorder %s1784_s24, 3 }
  0xc5   : > { %s510_s15 = scalar_select %p509_p0, %s1788_s25, 1 }
  0xc6   : > { %s512_s3 = scalar_select %p511_p3, %s1784_s24, 3 }
  0xc7   : > { %s1245_s28 = sshll.u32 %s510_s15, 2  ;;  %s508_s21 = scalar_lea.vmem [#allocation15], %s2117_s18 }
  0xc8   : > { %s514_s16 = sadd.s32 %s1245_s28, %s512_s3  ;;  %p1247_p8 = scmp.ne.s32.totalorder %s1784_s24, 0 }
  0xc9   : > { %s1246_s12 = sshll.u32 %s514_s16, 3  ;;  %vm522_vm0 = vcmask (!%p1247_p8), 516096   ;;  %vm524_vm1 = vcmask (!%p1247_p8), 523264   ;;  %v1810_v0 = vmov (!%p1247_p8), 0.0  }
  0xca   : > { %s516_s20 = scalar_lea.vmem %s2315_s0, %s1246_s12  ;;  %521 = sbr.rel (%p1247_p8) target bundleno = 209 (0xd1), region = 96  ;;  %523 = vst.msk [vmem:[#allocation2] sm:$0x1] (!%p1247_p8), %vm522_vm0, %v1810_v0 }
  0xcb   : > { %525 = vst.msk [vmem:[#allocation3] sm:$0xff] (!%p1247_p8), %vm524_vm1, %v1810_v0 }
  0xd1 PF: > { %v2127_v1 = vld [vmem:[%s516_s20] sm:$0xff]  ;;  %vm531_vm2 = vcmask 261120   ;;  %v1490_v4 = vld [vmem:[#allocation4] sm:$0xff]   ;;  %v1811_v5 = vmov 0.0   ;;  %vm1812_vm3 = vmmov 0   ;;  %v1491_v6 = vld [vmem:[#allocation4 + $0x8] sm:$0xff]   ;;  %v526_v8 = vlaneseq }
  0xd2   : > { %v530_v2 = vmul.f32 %v2127_v1, %v2127_v1  ;;  %1300 = vmatprep.subr.bf16.mxu1 %v1811_v5  ;;  %1304 = vmatprep.mubr.msk.bf16.mxu1 %vm1812_vm3, %v1811_v5  ;;  %v529_v11 = vld [vmem:[%s2316_s1] sm:$0x1]  ;;  %v1493_v20 = vld [vmem:[%s2320_s5 + $0x8] sm:$0xff]   ;;  %v1494_v21 = vld [vmem:[%s2320_s5 + $0x10] sm:$0xff]   ;;  %s1813_s16 = smov 64   ;;  %vm668_vm7 = vcmask 523264  }
  0xd3   : > { %1301 = vmatpush3.bf16.msra.mxu1 %v1490_v4  ;;  %1320 = vmatprep.subr.bf16.mxu0 %v1811_v5  ;;  %v2140_v10 = vshrl.u32 %v526_v8, 7  ;;  %v538_v12 = vmul.f32 5.656854, %v529_v11  ;;  %v1492_v19 = vld [vmem:[%s2320_s5] sm:$0xff]   ;;  %v1495_v22 = vld [vmem:[%s2320_s5 + $0x18] sm:$0xff]   ;;  %vm816_vm14 = vcmask 523271  }
  0xd4   : > { %v532_v3 = vsel %vm531_vm2, %v530_v2, 0.0  ;;  %1302 = vmatprep.subr.bf16.mxu1 %v1811_v5  ;;  %1328 = vmatprep.mubr.msk.bf16.mxu0 %vm1812_vm3, %v1811_v5  ;;  %v607_v27 = vld [vmem:[#allocation3] sm:$0xff]  ;;  %v606_v31 = vld [vmem:[#allocation7] sm:$0xf]  ;;  %v1251_v40 = vld [vmem:[%s2319_s4] ss:$0 sm:$0xff] }
  0xd5   : > { %533 = vadd.xlane.f32.xlu0 %v532_v3  ;;  %v2146_v13 = vsub.s32 0, %v2140_v10  ;;  %v610_v28 = vsub.s32 3, %v2140_v10  ;;  %v635_v29 = vrot.slane %v607_v27, 7  ;;  %v649_v30 = vrot.slane %v607_v27, 6  ;;  %v1252_v2 = vld [vmem:[#allocation9] ss:$0 sm:$0xff] }
  0xd6   : > { %v630_v32 = vsub.s32 2, %v2140_v10  ;;  %v644_v33 = vsub.s32 1, %v2140_v10  ;;  %vm634_vm4 = vcmp.lt.s32.totalorder %v2140_v10, 1  ;;  %vm648_vm5 = vcmp.lt.s32.totalorder %v2140_v10, 2  ;;  %s1275_s14 = sshll.u32 %s1788_s25, 2  ;;  %s1089_s30 = sshll.u32 %s508_s21, 4  ;;  %s2259_s30 = int_to_ptr.vmem [resolvable:$true] %s1089_s30 }
  0xd7   : > { %1303 = vmatpush3.bf16.msra.mxu1 %v1491_v6  ;;  %v543_v14 = vrot.slane %v538_v12, %v2146_v13  ;;  %v663_v34 = vrot.slane %v607_v27, 5  ;;  %v611_v35 = vrot.slane %v606_v31, %v610_v28  ;;  %v636_v36 = vsel %vm634_vm4, %v635_v29, 0.0  ;;  %s1085_s23 = sadd.s32 %s1784_s24, %s1275_s14  ;;  %s2368_s17 = sld [smem:[#allocation33_spill]] }
  0xd8   : > { %1308 = vmatprep.subr.bf16.mxu1 %v1811_v5  ;;  %v650_v37 = vsel %vm648_vm5, %v649_v30, 0.0  ;;  %vm662_vm6 = vcmp.lt.s32.totalorder %v2140_v10, 3  ;;  %v631_v38 = vrot.slane %v606_v31, %v630_v32  ;;  %v645_v39 = vrot.slane %v606_v31, %v644_v33  ;;  %s1276_s29 = sshll.u32 %s1085_s23, 7  ;;  %s1074_s24 = scalar_lea.sflag [#allocation6], %s506_s13 }
  0xd9   : > { %vm625_vm8 = vcmp.ge.s32.totalorder %v2140_v10, 1  ;;  %vm639_vm9 = vcmp.ge.s32.totalorder %v2140_v10, 2  ;;  %v664_v44 = vsel %vm662_vm6, %v663_v34, 0.0  ;;  %vm653_vm10 = vcmp.ge.s32.totalorder %v2140_v10, 3  ;;  %s1690_s25 = scalar_lea.vmem %s2259_s30, 128  ;;  %s1814_s3 = smov [#allocation15]  }
  0xda   : > { %v637_v42 = vmul.f32 %v636_v36, %v631_v38  ;;  %v651_v43 = vmul.f32 %v650_v37, %v645_v39  ;;  %v659_v49 = vrot.slane %v606_v31, %v2146_v13  ;;  %vm799_vm13 = vcmp.ge.s32.totalorder %v2140_v10, 4  ;;  %p1691_p10 = scmp.ne.s32.totalorder %s2259_s30, %s1690_s25  ;;  %s1694_s28 = sshll.u32 %s1814_s3, 4  ;;  %s1695_s28 = int_to_ptr.vmem [resolvable:$false] %s1694_s28 }
  0xdb   : > { %s1696_s12 = scalar_lea.vmem %s1695_s28, 256  ;;  %p1697_p6 = scmp.lt.s32.totalorder %s2259_s30, %s1695_s28 }
  0xdc   : > { %v652_v54 = vadd.f32 %v651_v43, %v637_v42  ;;  %v665_v55 = vmul.f32 %v664_v44, %v659_v49  ;;  %p1698_p7 = scmp.lt.s32.totalorder %s1696_s12, %s1690_s25 }
  0xdd   : > { %s2257_s15 = scalar_lea.hbm %s2368_s17, %s1276_s29 }
  0xde   : > { %v666_v61 = vadd.f32 %v665_v55, %v652_v54  ;;  %p1699_p9 = por %p1698_p7, %p1697_p6 }
 0x162   : > { %v534_v7 = vpop.xlane.xlu0 %533 }
 0x163   : > { %v535_v9 = vadd.f32 1e-30, %v534_v7 }
 0x165   : > { %1506 = vrsqrt.f32 %v535_v9 }
 0x16f   : > { %v1507_v15 = vpop.eup %1506 }
 0x170   : > { %v537_v16 = vmul.f32 %v1507_v15, %v2127_v1  ;;  %v1496_v15 = vld [vmem:[%s2323_s8] sm:$0xff]  }
 0x171   : > { %1321 = vmatpush3.bf16.msra.mxu0 %v1496_v15  ;;  %v1500_v15 = vld [vmem:[#allocation13] sm:$0xff]  }
 0x172   : > { %v545_v17 = vmul.f32 %v543_v14, %v537_v16  ;;  %1322 = vmatprep.subr.bf16.mxu0 %v1811_v5  ;;  %v1497_v16 = vld [vmem:[%s2323_s8 + $0x8] sm:$0xff]  }
 0x174   : > { %v546_v18 = vpack.c.bf16 %v545_v17, %v545_v17  ;;  %v1498_v17 = vld [vmem:[%s2323_s8 + $0x10] sm:$0xff]  }
 0x175   : > { %1323 = vmatpush3.bf16.msra.mxu0 %v1497_v16  ;;  %v1501_v16 = vld [vmem:[#allocation13 + $0x8] sm:$0xff]  }
 0x176   : > { %1305 = vmatmul.mubr.msk.bf16.vlgmr.msra.gmra.mrb[0].mxu1 %vm531_vm2, %v546_v18  ;;  %1324 = vmatprep.subr.bf16.mxu0 %v1811_v5  ;;  %v1499_v18 = vld [vmem:[%s2323_s8 + $0x18] sm:$0xff]  }
 0x177   : > { %1316 = vmatprep.mubr.msk.bf16.mxu1 %vm1812_vm3, %v1811_v5  ;;  %1309 = vmatpush3.bf16.msra.mxu1 %v1492_v19  ;;  %v1259_v19 = vld [vmem:[#allocation10] ss:$0 sm:$0xff] }
 0x178   : > { %1310 = vmatprep.subr.bf16.mxu1 %v1811_v5 }
 0x179   : > { %1325 = vmatpush3.bf16.msra.mxu0 %v1498_v17 }
 0x17a   : > { %1326 = vmatprep.subr.bf16.mxu0 %v1811_v5 }
 0x17b   : > { %1311 = vmatpush3.bf16.msra.mxu1 %v1493_v20 }
 0x17c   : > { %1312 = vmatprep.subr.bf16.mxu1 %v1811_v5 }
 0x17d   : > { %1327 = vmatpush3.bf16.msra.mxu0 %v1499_v18 }
 0x17e   : > { %1340 = vmatprep.subr.bf16.mxu0 %v1811_v5 }
 0x17f   : > { %1313 = vmatpush3.bf16.msra.mxu1 %v1494_v21 }
 0x180   : > { %1314 = vmatprep.subr.bf16.mxu1 %v1811_v5 }
 0x183   : > { %1315 = vmatpush3.bf16.msra.mxu1 %v1495_v22 }
 0x184   : > { %1332 = vmatprep.subr.bf16.mxu1 %v1811_v5 }
 0x249   : > { %v2168_v23 = vpop.f32.mrb[0].mxu1 }
 0x24a   : > { %613 = vrot.lane.b32.xlu0 %v2168_v23, %s1813_s16  ;;  %v1306_v24 = vpop.f32.mrb[1].mxu1  ;;  %v819_v27 = vmul.f32 0.044715, %v2168_v23 }
 0x24b   : > { %v603_v25 = vpop.f32.mrb[2].mxu1 }
 0x24c   : > { %v1307_v26 = vpop.f32.mrb[3].mxu1  ;;  %v820_v30 = vmul.f32 %v819_v27, %v2168_v23  ;;  %v1503_v27 = vld [vmem:[%s2326_s11 + $0x8] sm:$0xff]  }
 0x24e   : > { %v821_v33 = vmul.f32 %v820_v30, %v2168_v23 }
 0x2bc   : > { %v614_v41 = vpop.permute.xlu0 %613 }
 0x2bd   : > { %v616_v45 = vmul.f32 %v614_v41, %v611_v35  ;;  %v626_v46 = vrot.slane %v614_v41, 7  ;;  %v640_v47 = vrot.slane %v614_v41, 6  ;;  %v654_v48 = vrot.slane %v614_v41, 5  ;;  %669 = vst.msk [vmem:[#allocation3] sm:$0xff] %vm668_vm7, %v614_v41 }
 0x2bf   : > { %v624_v50 = vadd.f32 %v1251_v40, %v616_v45  ;;  %v627_v51 = vsel %vm625_vm8, %v626_v46, 0.0  ;;  %v641_v52 = vsel %vm639_vm9, %v640_v47, 0.0  ;;  %v655_v56 = vsel %vm653_vm10, %v654_v48, 0.0 }
 0x2c0   : > { %v632_v53 = vmul.f32 %v631_v38, %v627_v51  ;;  %v646_v58 = vmul.f32 %v645_v39, %v641_v52  ;;  %v660_v60 = vmul.f32 %v659_v49, %v655_v56  ;;  %v822_v39 = vadd.f32 %v821_v33, %v2168_v23 }
 0x2c2   : > { %v633_v57 = vadd.f32 %v632_v53, %v624_v50  ;;  %v823_v43 = vmul.f32 0.7978846, %v822_v39 }
 0x2c4   : > { %v647_v59 = vadd.f32 %v646_v58, %v633_v57 }
 0x2c6   : > { %v661_v62 = vadd.f32 %v660_v60, %v647_v59  ;;  %v1260_v60 = vld [vmem:[#allocation2] ss:$0 sm:$0xff] }
 0x2c8   : > { %v667_v63 = vadd.f32 %v666_v61, %v661_v62 }
 0x2ca   : > { %v670_v0 = vpack.c.bf16 %v667_v63, %v667_v63 }
 0x2cc   : > { %1317 = vmatmul.mubr.msk.bf16.vlgmr.msra.gmra.mrb[4].mxu1 %vm668_vm7, %v670_v0 }
 0x2cd   : > { %1336 = vmatprep.mubr.msk.bf16.mxu1 %vm1812_vm3, %v1811_v5  ;;  %1333 = vmatpush3.bf16.msra.mxu1 %v1500_v15 }
 0x2ce   : > { %1334 = vmatprep.subr.bf16.mxu1 %v1811_v5 }
 0x2d1   : > { %1335 = vmatpush3.bf16.msra.mxu1 %v1501_v16 }
 0x39f   : > { %v747_v3 = vpop.f32.mrb[4].mxu1 }
 0x3a0   : > { %v748_v4 = vadd.f32 %v1252_v2, %v747_v3  ;;  %v1318_v6 = vpop.f32.mrb[5].mxu1 }
 0x3a1   : > { %v750_v7 = vpop.f32.mrb[6].mxu1 }
 0x3a2   : > { %v1258_v8 = vmul.f32 -1.442695, %v748_v4  ;;  %v1319_v9 = vpop.f32.mrb[7].mxu1 }
 0x3a4   : > { %1508 = vpow2.f32 %v1258_v8 }
 0x3ae   : > { %v1509_v11 = vpop.eup %1508 }
 0x3af   : > { %v757_v12 = vadd.f32 1.0, %v1509_v11 }
 0x3b1   : > { %1510 = vrcp.f32 %v757_v12 }
 0x3bb   : > { %v1511_v14 = vpop.eup %1510 }
 0x3bc   : > { %780 = vrot.lane.b32.xlu1 %v1511_v14, %s1813_s16  ;;  %v766_v20 = vmul.f32 %v1511_v14, %v1259_v19  ;;  %v905_v19 = vld [vmem:[#allocation12] sm:$0x1] }
 0x3be   : > { %v767_v21 = vmul.f32 1.442695, %v766_v20  ;;  %v913_v20 = vmul.f32 5.656854, %v905_v19 }
 0x3c0   : > { %1512 = vpow2.f32 %v767_v21 }
 0x3ca   : > { %v1513_v22 = vpop.eup %1512 }
 0x3cb   : > { %v769_v24 = vmul.f32 %v1513_v22, %v1513_v22  ;;  %v789_v29 = vrot.slane %v1513_v22, 7 }
 0x3cd   : > { %v770_v25 = vsub.f32 1.0, %v769_v24  ;;  %v790_v32 = vmul.f32 %v1513_v22, %v789_v29 }
 0x3cf   : > { %v771_v26 = vadd.f32 1e-06, %v770_v25  ;;  %v791_v36 = vsel %vm625_vm8, %v790_v32, %v1513_v22 }
 0x3d0   : > { %v796_v41 = vrot.slane %v791_v36, 6 }
 0x3d1   : > { %1514 = vrsqrt.f32 %v771_v26  ;;  %vm774_vm11 = vcmp.eq.f32.partialorder %v771_v26, inf  ;;  %v777_v35 = vand.u32 2147483648, %v771_v26  ;;  %vm776_vm12 = vcmp.eq.f32.partialorder %v771_v26, 0.0 }
 0x3d2   : > { %v797_v45 = vmul.f32 %v796_v41, %v791_v36  ;;  %1516 = vtanh.f32 %v823_v43 }
 0x3d4   : > { %v798_v48 = vsel %vm639_vm9, %v797_v45, %v791_v36 }
 0x3d5   : > { %v804_v51 = vrot.slane %v798_v48, 4 }
 0x3d7   : > { %v805_v54 = vmul.f32 %v804_v51, %v798_v48 }
 0x3d9   : > { %v806_v59 = vsel %vm799_vm13, %v805_v54, %v798_v48 }
 0x3da   : > { %v814_v0 = vmul.f32 %v1260_v60, %v806_v59 }
 0x3db   : > { %v1515_v28 = vpop.eup %1514 }
 0x3dc   : > { %v773_v31 = vmul.f32 %v1515_v28, %v771_v26  ;;  %v1517_v56 = vpop.eup %1516  ;;  %v1505_v28 = vld [vmem:[%s2326_s11 + $0x18] sm:$0xff]  }
 0x3dd   : > { %v825_v61 = vadd.f32 1.0, %v1517_v56 }
 0x3de   : > { %v775_v34 = vsel %vm774_vm11, %v771_v26, %v773_v31  ;;  %v1502_v26 = vld [vmem:[%s2326_s11] sm:$0xff]  }
 0x3df   : > { %v778_v38 = vsel %vm776_vm12, %v777_v35, %v775_v34 }
 0x42e   : > { %v781_v37 = vpop.permute.xlu1 %780 }
 0x42f   : > { %v783_v40 = vmul.f32 %v781_v37, %v778_v38 }
 0x431   : > { %v784_v42 = vmul.f32 %v783_v40, %v667_v63  ;;  %v818_v63 = vmul.f32 0.5, %v2168_v23 }
 0x433   : > { %v785_v44 = vrot.slane %v784_v42, 7  ;;  %v826_v4 = vmul.f32 %v825_v61, %v818_v63 }
 0x435   : > { %v786_v46 = vmul.f32 %v1513_v22, %v785_v44 }
 0x437   : > { %v787_v47 = vadd.f32 %v786_v46, %v784_v42 }
 0x439   : > { %v788_v49 = vsel %vm625_vm8, %v787_v47, %v784_v42 }
 0x43a   : > { %v792_v50 = vrot.slane %v788_v49, 6 }
 0x43c   : > { %v793_v52 = vmul.f32 %v792_v50, %v791_v36 }
 0x43e   : > { %v794_v53 = vadd.f32 %v793_v52, %v788_v49 }
 0x440   : > { %v795_v55 = vsel %vm639_vm9, %v794_v53, %v788_v49 }
 0x441   : > { %v800_v57 = vrot.slane %v795_v55, 4 }
 0x443   : > { %v801_v58 = vmul.f32 %v800_v57, %v798_v48 }
 0x445   : > { %v802_v62 = vadd.f32 %v801_v58, %v795_v55 }
 0x447   : > { %v803_v2 = vsel %vm799_vm13, %v802_v62, %v795_v55 }
 0x448   : > { %v815_v3 = vadd.f32 %v814_v0, %v803_v2 }
 0x44a   : > { %817 = vst.msk [vmem:[#allocation2 - $0x7] sm:$0x80] %vm816_vm14, %v815_v3  ;;  %v827_v6 = vmul.f32 %v826_v4, %v815_v3 }
 0x44c   : > { %v828_v7 = vpack.c.bf16 %v827_v6, %v827_v6 }
 0x44e   : > { %1329 = vmatmul.mubr.msk.bf16.vlgmr.msra.gmra.mrb[0].mxu0 %vm668_vm7, %v828_v7 }
 0x44f   : > { %1348 = vmatprep.mubr.msk.bf16.mxu0 %vm1812_vm3, %v1811_v5  ;;  %1341 = vmatpush3.bf16.msra.mxu0 %v1502_v26 }
 0x450   : > { %1342 = vmatprep.subr.bf16.mxu0 %v1811_v5 }
 0x453   : > { %1343 = vmatpush3.bf16.msra.mxu0 %v1503_v27 }
 0x454   : > { %1344 = vmatprep.subr.bf16.mxu0 %v1811_v5 }
 0x521   : > { %v898_v10 = vpop.f32.mrb[0].mxu0 }
 0x522   : > { %v904_v8 = vadd.f32 %v898_v10, %v2127_v1  ;;  %v1330_v9 = vpop.f32.mrb[1].mxu0  ;;  %v918_v1 = vrot.slane %v913_v20, %v2146_v13  ;;  %v1504_v13 = vld [vmem:[%s2326_s11 + $0x10] sm:$0xff]  }
 0x523   : > { %v901_v11 = vpop.f32.mrb[2].mxu0  ;;  %1345 = vmatpush3.bf16.msra.mxu0 %v1504_v13 }
 0x524   : > { %v1331_v12 = vpop.f32.mrb[3].mxu0  ;;  %v906_v23 = vmul.f32 %v904_v8, %v904_v8  ;;  %1346 = vmatprep.subr.bf16.mxu0 %v1811_v5 }
 0x526   : > { %v907_v14 = vsel %vm531_vm2, %v906_v23, 0.0 }
 0x527   : > { %908 = vadd.xlane.f32.xlu1 %v907_v14  ;;  %1347 = vmatpush3.bf16.msra.mxu0 %v1505_v28 }
 0x5b4   : > { %v909_v17 = vpop.xlane.xlu1 %908 }
 0x5b5   : > { %v910_v18 = vadd.f32 1e-30, %v909_v17 }
 0x5b7   : > { %1518 = vrsqrt.f32 %v910_v18 }
 0x5c1   : > { %v1519_v21 = vpop.eup %1518 }
 0x5c2   : > { %v912_v22 = vmul.f32 %v1519_v21, %v904_v8 }
 0x5c4   : > { %v920_v24 = vmul.f32 %v918_v1, %v912_v22 }
 0x5c6   : > { %v921_v25 = vpack.c.bf16 %v920_v24, %v920_v24 }
 0x5c8   : > { %1337 = vmatmul.mubr.msk.bf16.vlgmr.msra.gmra.mrb[8].mxu1 %vm531_vm2, %v921_v25 }
 0x69b   : > { %v975_v29 = vpop.f32.mrb[8].mxu1 }
 0x69c   : > { %991 = vrot.lane.b32.xlu0 %v975_v29, %s1813_s16  ;;  %v1338_v30 = vpop.f32.mrb[9].mxu1  ;;  %v982_v33 = vmul.f32 0.044715, %v975_v29  ;;  %v981_v39 = vmul.f32 0.5, %v975_v29  ;;  %s2367_s16 = sld [smem:[#allocation27_spill]] }
 0x69d   : > { %v978_v31 = vpop.f32.mrb[10].mxu1 }
 0x69e   : > { %v1339_v32 = vpop.f32.mrb[11].mxu1  ;;  %v983_v34 = vmul.f32 %v982_v33, %v975_v29 }
 0x6a0   : > { %v984_v35 = vmul.f32 %v983_v34, %v975_v29 }
 0x6a2   : > { %v985_v36 = vadd.f32 %v984_v35, %v975_v29  ;;  %p2369_p12 = scmp.ne.s32.totalorder %s2367_s16, 0 }
 0x6a4   : > { %v986_v37 = vmul.f32 0.7978846, %v985_v36  ;;  %p1692_p4 = pnand %p1691_p10, %p2369_p12 }
 0x6a6   : > { %1520 = vtanh.f32 %v986_v37  ;;  %p1693_p5 = pneg %p1692_p4 }
 0x6a8   : > { %p1700_p11 = pnand %p1699_p9, %p1693_p5 }
 0x6b0   : > { %v1521_v5 = vpop.eup %1520 }
 0x6b1   : > { %v988_v38 = vadd.f32 1.0, %v1521_v5 }
 0x6b3   : > { %v989_v40 = vmul.f32 %v988_v38, %v981_v39 }
 0x70e   : > { %v992_v41 = vpop.permute.xlu0 %991 }
 0x70f   : > { %v994_v42 = vmul.f32 %v992_v41, %v989_v40 }
 0x711   : > { %v995_v43 = vpack.c.bf16 %v994_v42, %v994_v42 }
 0x713   : > { %1349 = vmatmul.mubr.msk.bf16.vlgmr.msra.gmra.mrb[4].mxu0 %vm668_vm7, %v995_v43 }
 0x7e6   : > { %v1065_v44 = vpop.f32.mrb[4].mxu0 }
 0x7e7   : > { %v1071_v45 = vadd.f32 %v1065_v44, %v904_v8  ;;  %v1350_v46 = vpop.f32.mrb[5].mxu0 }
 0x7e8   : > { %v1068_v47 = vpop.f32.mrb[6].mxu0 }
 0x7e9   : > { %1072 = vst.msk [vmem:[%s508_s21] sm:$0xff] %vm531_vm2, %v1071_v45  ;;  %v1351_v48 = vpop.f32.mrb[7].mxu0 }
 0x7ea   : > { %1703 = shalt.err (!%p1700_p11)
}
 0x7eb   : > { %s1704_s13 = scalar_lea.hbm %s2257_s15, 128  ;;  %s1708_s26 = scalar_lea.hbm %s2368_s17, 1024 }
 0x7ec   : > { %p1705_p13 = scmp.ne.s32.totalorder %s2257_s15, %s1704_s13  ;;  %p1709_p0 = scmp.lt.u32.totalorder %s2257_s15, %s2368_s17 }
 0x7ed   : > { %p1710_p3 = scmp.lt.u32.totalorder %s1708_s26, %s1704_s13  ;;  %p1712_p10 = scmp.lt.u32.totalorder %s1704_s13, %s2257_s15 }
 0x7ee   : > { %p1706_p1 = pnand %p1705_p13, %p2369_p12 }
 0x7ef   : > { %p1711_p8 = por %p1710_p3, %p1709_p0 }
 0x7f0   : > { %p1707_p2 = pneg %p1706_p1 }
 0x7f1   : > { %p1713_p4 = por %p1712_p10, %p1711_p8 }
 0x7f3   : > { %p1714_p5 = pnand %p1713_p4, %p1707_p2 }
 0x7f5   : > { %1717 = shalt.err (!%p1714_p5)
}
 0x7f6   : > { %1376 = dma.vmem_to_hbm [thread:$0]  (%p2369_p12), %s2259_s30, 128, %s2257_s15, %s1074_s24  }
 0x7f7 PF: > { %s2370_s14 = sld [smem:[#allocation25_spill]]  ;;  %s2371_s23 = sld [smem:[#allocation21_spill]] }
 0x7f8   : > { %s2372_s29 = sld [smem:[#allocation29_spill]] }
 0x7fd   : > { %p1413_p6 = scmp.ge.s32.totalorder %s2370_s14, 2  ;;  %s1101_s27 = sand.u32 1, %s2371_s23  }
 0x7fe   : > { %p2373_p7 = scmp.ne.s32.totalorder %s2372_s29, 0  ;;  %s1102_s7 = scalar_lea.sflag [#allocation6], %s1101_s27 }
 0x800   : > { %p1398_p9 = pnand %p1413_p6, %p2373_p7 }
 0x802   : > { %1767 = dma.done.wait (!%p1398_p9), %s1102_s7, 128  }
 0x803   : > { %1769 = vsyncadd (!%p1398_p9), %s1102_s7, 4294967168  ;;  %s29_s28 = sadd.s32 1, %s2370_s14   ;;  %s2374_s25 = sld [smem:[#allocation22_spill]] }
 0x804   : > { %p26_p11 = scmp.ge.s32.totalorder %s29_s28, 10   ;;  %s2375_s23 = sld [smem:[#allocation30_spill]] }
 0x805   : > { %s2376_s24 = sld [smem:[#allocation23_spill]]  ;;  %s2377_s16 = sld [smem:[#allocation24_spill]] }
 0x806   : > { %s2378_s26 = sld [smem:[#allocation26_spill]]  ;;  %s2379_s27 = sld [smem:[#allocation28_spill]] }
 0x807   : > { %s2380_s21 = smov %s1776_s22  ;;  %28 = sbr.rel (!%p26_p11) target bundleno = 13 (0xd), region = 132 }
 0x809   : > { %s2381_s22 = smov %s2374_s25 }
 0x80b   : > { %s2382_s25 = smov %s2377_s16 }
 0x80e   :  { %1107 = vsyncpa [#allocation5], 1 }
 0x80f   :  { %1109 = vsyncpa [#allocation5 + $0x1], 1 }
 0x810   :  { %1110 = vsyncpa [#allocation8], 1 }
 0x811   :  { %1111 = vsyncpa [#allocation11], 1 }
 0x812   :  { %1112 = vsyncpa [#allocation14], 1 }
 0x813   :  { %1113 = vsyncpa [#allocation6], 1 }
 0x814   :  { %1115 = vsyncpa [#allocation6 + $0x1], 1 }

</bundles_post_ra>
